<compile_context>
chip_gen: v5e
topology: v5e:2x2
jax: 0.10.0
libtpu: 0.0.40
codegen_flags: <defaults>
</compile_context>

<pallas_src>
import functools
import math

import jax
import jax.numpy as jnp
from jax import lax
from jax.experimental import pallas as pl
from jax.experimental.pallas import tpu as pltpu

LN_EPS = 1e-5
MXU_DTYPE = jnp.bfloat16   # MXU operand dtype (accumulation is always f32)


# ---------------------------------------------------------------------------
# Shared math (used inside the Pallas kernels and by the pure-JAX reference).
# Everything operates on a single batch element: activations are (seq, d_model).
# ---------------------------------------------------------------------------
def _layernorm(x, gamma, beta):
    mu = jnp.mean(x, axis=-1, keepdims=True)
    var = jnp.mean(jnp.square(x - mu), axis=-1, keepdims=True)
    return (x - mu) * lax.rsqrt(var + LN_EPS) * gamma + beta


def _linear(x, w, b):
    # x: (M, In) f32; w: (Out, In) bf16 (torch convention); b: (1, Out) f32.
    y = lax.dot_general(x.astype(w.dtype), w, (((1,), (1,)), ((), ())),
                        preferred_element_type=jnp.float32)
    return y + b


def _softmax_rows(s, approx_recip):
    s = s - jnp.max(s, axis=-1, keepdims=True)
    p = jnp.exp(s)
    denom = jnp.sum(p, axis=-1, keepdims=True)
    if approx_recip:
        inv = pl.reciprocal(denom, approx=True)   # EUP slot -> essentially free
    else:
        inv = 1.0 / denom
    return p * inv


def _mha(xq, xkv, wq, bq, wk, bk, wv, bv, wo, bo, nheads, approx_recip):
    # nn.MultiheadAttention semantics (in_proj pre-split into q/k/v by the wrapper).
    d = xq.shape[-1]
    dh = d // nheads
    scale = 1.0 / math.sqrt(dh)
    q = _linear(xq, wq, bq) * scale
    k = _linear(xkv, wk, bk)
    v = _linear(xkv, wv, bv)
    heads = []
    # TODO(synk): heads are a small static unrolled loop (H=4, dh=8); a rank-4
    # multi-batch dot_general over (head, q, k) is not reliably lowerable in
    # Mosaic, so per-head 2-D MXU dots are used instead.
    for h in range(nheads):
        sl = slice(h * dh, (h + 1) * dh)
        qh = q[:, sl].astype(MXU_DTYPE)
        kh = k[:, sl].astype(MXU_DTYPE)
        vh = v[:, sl].astype(MXU_DTYPE)
        s = lax.dot_general(qh, kh, (((1,), (1,)), ((), ())),
                            preferred_element_type=jnp.float32)
        p = _softmax_rows(s, approx_recip)
        heads.append(lax.dot_general(p.astype(MXU_DTYPE), vh,
                                     (((1,), (0,)), ((), ())),
                                     preferred_element_type=jnp.float32))
    o = jnp.concatenate(heads, axis=-1)
    return _linear(o, wo, bo)


def _encoder_layer(x, p, nheads, approx_recip):
    (wq, bq, wk, bk, wv, bv, wo, bo, w1, b1, w2, b2, g1, be1, g2, be2) = p
    a = _mha(x, x, wq, bq, wk, bk, wv, bv, wo, bo, nheads, approx_recip)
    x = _layernorm(x + a, g1, be1)
    h = jnp.maximum(_linear(x, w1, b1), 0.0)
    x = _layernorm(x + _linear(h, w2, b2), g2, be2)
    return x


def _decoder_layer(x, mem, p, nheads, approx_recip):
    (sq, sbq, sk, sbk, sv, sbv, so, sbo,
     cq, cbq, ck, cbk, cv, cbv, co, cbo,
     w1, b1, w2, b2, g1, be1, g2, be2, g3, be3) = p
    a = _mha(x, x, sq, sbq, sk, sbk, sv, sbv, so, sbo, nheads, approx_recip)
    x = _layernorm(x + a, g1, be1)
    a = _mha(x, mem, cq, cbq, ck, cbk, cv, cbv, co, cbo, nheads, approx_recip)
    x = _layernorm(x + a, g2, be2)
    h = jnp.maximum(_linear(x, w1, b1), 0.0)
    x = _layernorm(x + _linear(h, w2, b2), g3, be3)
    return x


# ---------------------------------------------------------------------------
# Fused layer-stack kernels.  grid = (batch, layer); layer is the inner,
# "arbitrary" axis; the output block (same index across layers) is the VMEM-
# resident activation carry.  Per-layer weights arrive via layer-indexed
# BlockSpecs (auto double-buffered prefetch).
# ---------------------------------------------------------------------------
def _encoder_stack_kernel(x_ref, *rest, nheads):
    *p_refs, out_ref = rest
    layer = pl.program_id(1)

    @pl.when(layer == 0)
    def _():
        out_ref[...] = x_ref[...]

    p = tuple(r[0] for r in p_refs)          # drop the leading layer dim
    out_ref[...] = _encoder_layer(out_ref[...], p, nheads, approx_recip=True)


def _decoder_stack_kernel(x_ref, mem_ref, *rest, nheads):
    *p_refs, out_ref = rest
    layer = pl.program_id(1)

    @pl.when(layer == 0)
    def _():
        out_ref[...] = x_ref[...]

    p = tuple(r[0] for r in p_refs)
    out_ref[...] = _decoder_layer(out_ref[...], mem_ref[...], p, nheads,
                                  approx_recip=True)


def _param_specs(stacked):
    # Every stacked param is rank-3: (L, rows, cols); one layer per grid step.
    return [pl.BlockSpec((1,) + tuple(s.shape[1:]), lambda b, l: (l, 0, 0))
            for s in stacked]


def _encoder_stack_pallas(src2d, enc_p, nheads, batch, seq, n_layers):
    d = src2d.shape[-1]
    act_spec = pl.BlockSpec((seq, d), lambda b, l: (b, 0))
    return pl.pallas_call(
        functools.partial(_encoder_stack_kernel, nheads=nheads),
        out_shape=jax.ShapeDtypeStruct(src2d.shape, jnp.float32),
        grid_spec=pltpu.PrefetchScalarGridSpec(
            num_scalar_prefetch=0,
            grid=(batch, n_layers),
            in_specs=[act_spec] + _param_specs(enc_p),
            out_specs=act_spec,
        ),
        compiler_params=pltpu.CompilerParams(
            dimension_semantics=("parallel", "arbitrary")),
    )(src2d, *enc_p)


def _decoder_stack_pallas(tgt2d, mem2d, dec_p, nheads, batch, s_tgt, s_src,
                          n_layers):
    d = tgt2d.shape[-1]
    tgt_spec = pl.BlockSpec((s_tgt, d), lambda b, l: (b, 0))
    mem_spec = pl.BlockSpec((s_src, d), lambda b, l: (b, 0))
    return pl.pallas_call(
        functools.partial(_decoder_stack_kernel, nheads=nheads),
        out_shape=jax.ShapeDtypeStruct(tgt2d.shape, jnp.float32),
        grid_spec=pltpu.PrefetchScalarGridSpec(
            num_scalar_prefetch=0,
            grid=(batch, n_layers),
            in_specs=[tgt_spec, mem_spec] + _param_specs(dec_p),
            out_specs=tgt_spec,
        ),
        compiler_params=pltpu.CompilerParams(
            dimension_semantics=("parallel", "arbitrary")),
    )(tgt2d, mem2d, *dec_p)


# ---------------------------------------------------------------------------
# Full TransformerModel.forward (batch-first I/O, matching the module which
# permutes to/from seq-first around nn.Transformer).
# ---------------------------------------------------------------------------
def transformer_forward(sentences, image_sequences, params, nheads,
                        src_mask=None, tgt_mask=None, memory_mask=None):
    # TODO(synk): optional additive src/tgt/memory attention masks are not plumbed
    # into the kernels; the module's forward defaults them to None.
    assert src_mask is None and tgt_mask is None and memory_mask is None
    enc_p, dec_p = params
    b, s_src, d = sentences.shape
    s_tgt = image_sequences.shape[1]
    n_enc = enc_p[0].shape[0]
    n_dec = dec_p[0].shape[0]

    src2d = sentences.reshape(b * s_src, d)
    tgt2d = image_sequences.reshape(b * s_tgt, d)

    mem2d = _encoder_stack_pallas(src2d, enc_p, nheads, b, s_src, n_enc)
    out2d = _decoder_stack_pallas(tgt2d, mem2d, dec_p, nheads, b, s_tgt, s_src,
                                  n_dec)
    return out2d.reshape(b, s_tgt, d)


def reference_forward(sentences, image_sequences, params, nheads):
    # Pure-JAX reference with identical math (exact reciprocal instead of approx).
    enc_p, dec_p = params
    b = sentences.shape[0]
    n_enc = enc_p[0].shape[0]
    n_dec = dec_p[0].shape[0]
    outs = []
    for bi in range(b):
        mem = sentences[bi]
        for l in range(n_enc):
            p = tuple(a[l] for a in enc_p)
            mem = _encoder_layer(mem, p, nheads, approx_recip=False)
        x = image_sequences[bi]
        for l in range(n_dec):
            p = tuple(a[l] for a in dec_p)
            x = _decoder_layer(x, mem, p, nheads, approx_recip=False)
        outs.append(x)
    return jnp.stack(outs)


# ---------------------------------------------------------------------------
# Parameter init (torch layouts) and kernel-ready preparation
# (stack over layers, pre-split in_proj, cast weight matrices to bf16).
# ---------------------------------------------------------------------------
def init_transformer_params(key, d, n_enc, n_dec):
    ff = 2 * d
    keys = iter(jax.random.split(key, 8 * n_enc + 12 * n_dec))

    def w(shape, scale=0.05):
        return scale * jax.random.normal(next(keys), shape, dtype=jnp.float32)

    ones = lambda n: jnp.ones((n,), jnp.float32)
    zeros = lambda n: jnp.zeros((n,), jnp.float32)

    enc = []
    for _ in range(n_enc):
        enc.append((w((3 * d, d)), w((3 * d,)), w((d, d)), w((d,)),     # self-attn
                    w((ff, d)), w((ff,)), w((d, ff)), w((d,)),          # FFN
                    ones(d), zeros(d), ones(d), zeros(d)))              # norm1/2
    dec = []
    for _ in range(n_dec):
        dec.append((w((3 * d, d)), w((3 * d,)), w((d, d)), w((d,)),     # self-attn
                    w((3 * d, d)), w((3 * d,)), w((d, d)), w((d,)),     # cross-attn
                    w((ff, d)), w((ff,)), w((d, ff)), w((d,)),          # FFN
                    ones(d), zeros(d), ones(d), zeros(d), ones(d), zeros(d)))
    return enc, dec


def _split_in_proj(wqkv, bqkv, d):
    # (L, 3D, D)/(L, 3D) -> [wq, bq, wk, bk, wv, bv]; weights bf16, biases f32.
    L = wqkv.shape[0]
    b3 = bqkv.reshape(L, 1, 3 * d)
    return [wqkv[:, :d, :].astype(MXU_DTYPE), b3[..., :d],
            wqkv[:, d:2 * d, :].astype(MXU_DTYPE), b3[..., d:2 * d],
            wqkv[:, 2 * d:, :].astype(MXU_DTYPE), b3[..., 2 * d:]]


def _vec(v):
    return v[:, None, :]   # (L, N) -> (L, 1, N) so every param is rank-3


def prepare_encoder_params(enc_layers, d):
    cols = [jnp.stack(c) for c in zip(*enc_layers)]
    wqkv, bqkv, wo, bo, w1, b1, w2, b2, g1, be1, g2, be2 = cols
    return (_split_in_proj(wqkv, bqkv, d)
            + [wo.astype(MXU_DTYPE), _vec(bo),
               w1.astype(MXU_DTYPE), _vec(b1), w2.astype(MXU_DTYPE), _vec(b2),
               _vec(g1), _vec(be1), _vec(g2), _vec(be2)])


def prepare_decoder_params(dec_layers, d):
    cols = [jnp.stack(c) for c in zip(*dec_layers)]
    (s_wqkv, s_bqkv, s_wo, s_bo, c_wqkv, c_bqkv, c_wo, c_bo,
     w1, b1, w2, b2, g1, be1, g2, be2, g3, be3) = cols
    return (_split_in_proj(s_wqkv, s_bqkv, d)
            + [s_wo.astype(MXU_DTYPE), _vec(s_bo)]
            + _split_in_proj(c_wqkv, c_bqkv, d)
            + [c_wo.astype(MXU_DTYPE), _vec(c_bo)]
            + [w1.astype(MXU_DTYPE), _vec(b1), w2.astype(MXU_DTYPE), _vec(b2),
               _vec(g1), _vec(be1), _vec(g2), _vec(be2), _vec(g3), _vec(be3)])


if __name__ == "__main__":
    B, S_SRC, S_TGT, D, H = 2, 8, 8, 32, 4
    N_ENC, N_DEC = 2, 2

    key = jax.random.PRNGKey(0)
    k_src, k_tgt, k_par = jax.random.split(key, 3)
    sentences = jax.random.normal(k_src, (B, S_SRC, D), jnp.float32)
    image_sequences = jax.random.normal(k_tgt, (B, S_TGT, D), jnp.float32)

    raw_enc, raw_dec = init_transformer_params(k_par, D, N_ENC, N_DEC)
    params = (prepare_encoder_params(raw_enc, D), prepare_decoder_params(raw_dec, D))

    out = transformer_forward(sentences, image_sequences, params, H)
    out = jax.block_until_ready(out)

    ref = jax.block_until_ready(reference_forward(sentences, image_sequences, params, H))

    assert out.shape == (B, S_TGT, D), out.shape
    # tolerance covers the approx-reciprocal softmax normalization in the kernel
    assert bool(jnp.allclose(out, ref, rtol=2e-2, atol=2e-2)), "mismatch vs reference"
    print("KERNEL_OK")
</pallas_src>

<mosaic_0001>
module attributes {stable_mosaic.version = 11 : i64} {
  func.func @_encoder_stack_kernel(%arg0: i32, %arg1: i32, %arg2: memref<8x32xf32, #tpu.memory_space<vmem>>, %arg3: memref<1x32x32xbf16, #tpu.memory_space<vmem>>, %arg4: memref<1x1x32xf32, #tpu.memory_space<vmem>>, %arg5: memref<1x32x32xbf16, #tpu.memory_space<vmem>>, %arg6: memref<1x1x32xf32, #tpu.memory_space<vmem>>, %arg7: memref<1x32x32xbf16, #tpu.memory_space<vmem>>, %arg8: memref<1x1x32xf32, #tpu.memory_space<vmem>>, %arg9: memref<1x32x32xbf16, #tpu.memory_space<vmem>>, %arg10: memref<1x1x32xf32, #tpu.memory_space<vmem>>, %arg11: memref<1x64x32xbf16, #tpu.memory_space<vmem>>, %arg12: memref<1x1x64xf32, #tpu.memory_space<vmem>>, %arg13: memref<1x32x64xbf16, #tpu.memory_space<vmem>>, %arg14: memref<1x1x32xf32, #tpu.memory_space<vmem>>, %arg15: memref<1x1x32xf32, #tpu.memory_space<vmem>>, %arg16: memref<1x1x32xf32, #tpu.memory_space<vmem>>, %arg17: memref<1x1x32xf32, #tpu.memory_space<vmem>>, %arg18: memref<1x1x32xf32, #tpu.memory_space<vmem>>, %arg19: memref<8x32xf32, #tpu.memory_space<vmem>>) attributes {dimension_semantics = [#tpu.dimension_semantics<parallel>, #tpu.dimension_semantics<arbitrary>], iteration_bounds = array<i64: 2, 2>, scalar_prefetch = 0 : i64, scratch_operands = 0 : i64, tpu.core_type = #tpu.core_type<tc>, window_params = [{transform_indices = @transform_0, window_bounds = array<i64: 8, 32>}, {transform_indices = @transform_1, window_bounds = array<i64: 1, 32, 32>}, {transform_indices = @transform_2, window_bounds = array<i64: 1, 1, 32>}, {transform_indices = @transform_3, window_bounds = array<i64: 1, 32, 32>}, {transform_indices = @transform_4, window_bounds = array<i64: 1, 1, 32>}, {transform_indices = @transform_5, window_bounds = array<i64: 1, 32, 32>}, {transform_indices = @transform_6, window_bounds = array<i64: 1, 1, 32>}, {transform_indices = @transform_7, window_bounds = array<i64: 1, 32, 32>}, {transform_indices = @transform_8, window_bounds = array<i64: 1, 1, 32>}, {transform_indices = @transform_9, window_bounds = array<i64: 1, 64, 32>}, {transform_indices = @transform_10, window_bounds = array<i64: 1, 1, 64>}, {transform_indices = @transform_11, window_bounds = array<i64: 1, 32, 64>}, {transform_indices = @transform_12, window_bounds = array<i64: 1, 1, 32>}, {transform_indices = @transform_13, window_bounds = array<i64: 1, 1, 32>}, {transform_indices = @transform_14, window_bounds = array<i64: 1, 1, 32>}, {transform_indices = @transform_15, window_bounds = array<i64: 1, 1, 32>}, {transform_indices = @transform_16, window_bounds = array<i64: 1, 1, 32>}, {transform_indices = @transform_17, window_bounds = array<i64: 8, 32>}]} {
    %c0_i32 = arith.constant 0 : i32
    %0 = arith.cmpi eq, %arg1, %c0_i32 : i32
    %1 = arith.extui %0 : i1 to i32
    %c0_i32_0 = arith.constant 0 : i32
    %2 = arith.cmpi ne, %1, %c0_i32_0 : i32
    scf.if %2 {
      %c0_85 = arith.constant 0 : index
      %c0_86 = arith.constant 0 : index
      %188 = vector.load %arg2[%c0_85, %c0_86] : memref<8x32xf32, #tpu.memory_space<vmem>>, vector<8x32xf32>
      %c0_87 = arith.constant 0 : index
      %c0_88 = arith.constant 0 : index
      %189 = vector.load %arg19[%c0_87, %c0_88] : memref<8x32xf32, #tpu.memory_space<vmem>>, vector<8x32xf32>
      tpu.vector_store %arg19[%c0_87, %c0_88], %188 {strides = array<i32>} : memref<8x32xf32, #tpu.memory_space<vmem>>, vector<8x32xf32>,
    } else {
    }
    %c0 = arith.constant 0 : index
    %c0_1 = arith.constant 0 : index
    %c0_2 = arith.constant 0 : index
    %3 = vector.load %arg3[%c0, %c0_1, %c0_2] : memref<1x32x32xbf16, #tpu.memory_space<vmem>>, vector<1x32x32xbf16>
    %4 = vector.shape_cast %3 : vector<1x32x32xbf16> to vector<32x32xbf16>
    %c0_3 = arith.constant 0 : index
    %c0_4 = arith.constant 0 : index
    %c0_5 = arith.constant 0 : index
    %5 = vector.load %arg4[%c0_3, %c0_4, %c0_5] : memref<1x1x32xf32, #tpu.memory_space<vmem>>, vector<1x1x32xf32>
    %6 = vector.shape_cast %5 : vector<1x1x32xf32> to vector<1x32xf32>
    %c0_6 = arith.constant 0 : index
    %c0_7 = arith.constant 0 : index
    %c0_8 = arith.constant 0 : index
    %7 = vector.load %arg5[%c0_6, %c0_7, %c0_8] : memref<1x32x32xbf16, #tpu.memory_space<vmem>>, vector<1x32x32xbf16>
    %8 = vector.shape_cast %7 : vector<1x32x32xbf16> to vector<32x32xbf16>
    %c0_9 = arith.constant 0 : index
    %c0_10 = arith.constant 0 : index
    %c0_11 = arith.constant 0 : index
    %9 = vector.load %arg6[%c0_9, %c0_10, %c0_11] : memref<1x1x32xf32, #tpu.memory_space<vmem>>, vector<1x1x32xf32>
    %10 = vector.shape_cast %9 : vector<1x1x32xf32> to vector<1x32xf32>
    %c0_12 = arith.constant 0 : index
    %c0_13 = arith.constant 0 : index
    %c0_14 = arith.constant 0 : index
    %11 = vector.load %arg7[%c0_12, %c0_13, %c0_14] : memref<1x32x32xbf16, #tpu.memory_space<vmem>>, vector<1x32x32xbf16>
    %12 = vector.shape_cast %11 : vector<1x32x32xbf16> to vector<32x32xbf16>
    %c0_15 = arith.constant 0 : index
    %c0_16 = arith.constant 0 : index
    %c0_17 = arith.constant 0 : index
    %13 = vector.load %arg8[%c0_15, %c0_16, %c0_17] : memref<1x1x32xf32, #tpu.memory_space<vmem>>, vector<1x1x32xf32>
    %14 = vector.shape_cast %13 : vector<1x1x32xf32> to vector<1x32xf32>
    %c0_18 = arith.constant 0 : index
    %c0_19 = arith.constant 0 : index
    %c0_20 = arith.constant 0 : index
    %15 = vector.load %arg9[%c0_18, %c0_19, %c0_20] : memref<1x32x32xbf16, #tpu.memory_space<vmem>>, vector<1x32x32xbf16>
    %16 = vector.shape_cast %15 : vector<1x32x32xbf16> to vector<32x32xbf16>
    %c0_21 = arith.constant 0 : index
    %c0_22 = arith.constant 0 : index
    %c0_23 = arith.constant 0 : index
    %17 = vector.load %arg10[%c0_21, %c0_22, %c0_23] : memref<1x1x32xf32, #tpu.memory_space<vmem>>, vector<1x1x32xf32>
    %18 = vector.shape_cast %17 : vector<1x1x32xf32> to vector<1x32xf32>
    %c0_24 = arith.constant 0 : index
    %c0_25 = arith.constant 0 : index
    %c0_26 = arith.constant 0 : index
    %19 = vector.load %arg11[%c0_24, %c0_25, %c0_26] : memref<1x64x32xbf16, #tpu.memory_space<vmem>>, vector<1x64x32xbf16>
    %20 = vector.shape_cast %19 : vector<1x64x32xbf16> to vector<64x32xbf16>
    %c0_27 = arith.constant 0 : index
    %c0_28 = arith.constant 0 : index
    %c0_29 = arith.constant 0 : index
    %21 = vector.load %arg12[%c0_27, %c0_28, %c0_29] : memref<1x1x64xf32, #tpu.memory_space<vmem>>, vector<1x1x64xf32>
    %22 = vector.shape_cast %21 : vector<1x1x64xf32> to vector<1x64xf32>
    %c0_30 = arith.constant 0 : index
    %c0_31 = arith.constant 0 : index
    %c0_32 = arith.constant 0 : index
    %23 = vector.load %arg13[%c0_30, %c0_31, %c0_32] : memref<1x32x64xbf16, #tpu.memory_space<vmem>>, vector<1x32x64xbf16>
    %24 = vector.shape_cast %23 : vector<1x32x64xbf16> to vector<32x64xbf16>
    %c0_33 = arith.constant 0 : index
    %c0_34 = arith.constant 0 : index
    %c0_35 = arith.constant 0 : index
    %25 = vector.load %arg14[%c0_33, %c0_34, %c0_35] : memref<1x1x32xf32, #tpu.memory_space<vmem>>, vector<1x1x32xf32>
    %26 = vector.shape_cast %25 : vector<1x1x32xf32> to vector<1x32xf32>
    %c0_36 = arith.constant 0 : index
    %c0_37 = arith.constant 0 : index
    %c0_38 = arith.constant 0 : index
    %27 = vector.load %arg15[%c0_36, %c0_37, %c0_38] : memref<1x1x32xf32, #tpu.memory_space<vmem>>, vector<1x1x32xf32>
    %28 = vector.shape_cast %27 : vector<1x1x32xf32> to vector<1x32xf32>
    %c0_39 = arith.constant 0 : index
    %c0_40 = arith.constant 0 : index
    %c0_41 = arith.constant 0 : index
    %29 = vector.load %arg16[%c0_39, %c0_40, %c0_41] : memref<1x1x32xf32, #tpu.memory_space<vmem>>, vector<1x1x32xf32>
    %30 = vector.shape_cast %29 : vector<1x1x32xf32> to vector<1x32xf32>
    %c0_42 = arith.constant 0 : index
    %c0_43 = arith.constant 0 : index
    %c0_44 = arith.constant 0 : index
    %31 = vector.load %arg17[%c0_42, %c0_43, %c0_44] : memref<1x1x32xf32, #tpu.memory_space<vmem>>, vector<1x1x32xf32>
    %32 = vector.shape_cast %31 : vector<1x1x32xf32> to vector<1x32xf32>
    %c0_45 = arith.constant 0 : index
    %c0_46 = arith.constant 0 : index
    %c0_47 = arith.constant 0 : index
    %33 = vector.load %arg18[%c0_45, %c0_46, %c0_47] : memref<1x1x32xf32, #tpu.memory_space<vmem>>, vector<1x1x32xf32>
    %34 = vector.shape_cast %33 : vector<1x1x32xf32> to vector<1x32xf32>
    %c0_48 = arith.constant 0 : index
    %c0_49 = arith.constant 0 : index
    %35 = vector.load %arg19[%c0_48, %c0_49] : memref<8x32xf32, #tpu.memory_space<vmem>>, vector<8x32xf32>
    %36 = arith.truncf %35 : vector<8x32xf32> to vector<8x32xbf16>
    %cst = arith.constant dense<0.000000e+00> : vector<8x32xf32>
    %37 = tpu.matmul %36, %4, %cst {dimension_numbers = #tpu.dot_dimension_numbers<[1], [1], [0], [0], [0, 0, 1, 0], [], []>} : vector<8x32xbf16>, vector<32x32xbf16>, vector<8x32xf32> -> vector<8x32xf32>
    %38 = vector.broadcast %6 : vector<1x32xf32> to vector<8x32xf32>
    %39 = arith.addf %37, %38 : vector<8x32xf32>
    %cst_50 = arith.constant 0.353553385 : f32
    %40 = vector.broadcast %cst_50 : f32 to vector<8x32xf32>
    %41 = arith.mulf %39, %40 : vector<8x32xf32>
    %42 = arith.truncf %35 : vector<8x32xf32> to vector<8x32xbf16>
    %cst_51 = arith.constant dense<0.000000e+00> : vector<8x32xf32>
    %43 = tpu.matmul %42, %8, %cst_51 {dimension_numbers = #tpu.dot_dimension_numbers<[1], [1], [0], [0], [0, 0, 1, 0], [], []>} : vector<8x32xbf16>, vector<32x32xbf16>, vector<8x32xf32> -> vector<8x32xf32>
    %44 = vector.broadcast %10 : vector<1x32xf32> to vector<8x32xf32>
    %45 = arith.addf %43, %44 : vector<8x32xf32>
    %46 = arith.truncf %35 : vector<8x32xf32> to vector<8x32xbf16>
    %cst_52 = arith.constant dense<0.000000e+00> : vector<8x32xf32>
    %47 = tpu.matmul %46, %12, %cst_52 {dimension_numbers = #tpu.dot_dimension_numbers<[1], [1], [0], [0], [0, 0, 1, 0], [], []>} : vector<8x32xbf16>, vector<32x32xbf16>, vector<8x32xf32> -> vector<8x32xf32>
    %48 = vector.broadcast %14 : vector<1x32xf32> to vector<8x32xf32>
    %49 = arith.addf %47, %48 : vector<8x32xf32>
    %50 = vector.extract_strided_slice %41 {offsets = [0, 0], sizes = [8, 8], strides = [1, 1]} : vector<8x32xf32> to vector<8x8xf32>
    %51 = arith.truncf %50 : vector<8x8xf32> to vector<8x8xbf16>
    %52 = vector.extract_strided_slice %45 {offsets = [0, 0], sizes = [8, 8], strides = [1, 1]} : vector<8x32xf32> to vector<8x8xf32>
    %53 = arith.truncf %52 : vector<8x8xf32> to vector<8x8xbf16>
    %54 = vector.extract_strided_slice %49 {offsets = [0, 0], sizes = [8, 8], strides = [1, 1]} : vector<8x32xf32> to vector<8x8xf32>
    %55 = arith.truncf %54 : vector<8x8xf32> to vector<8x8xbf16>
    %cst_53 = arith.constant dense<0.000000e+00> : vector<8x8xf32>
    %56 = tpu.matmul %51, %53, %cst_53 {dimension_numbers = #tpu.dot_dimension_numbers<[1], [1], [0], [0], [0, 0, 1, 0], [], []>} : vector<8x8xbf16>, vector<8x8xbf16>, vector<8x8xf32> -> vector<8x8xf32>
    %cst_54 = arith.constant dense<0xFF800000> : vector<8xf32>
    %57 = vector.multi_reduction <maximumf>, %56, %cst_54 [1] : vector<8x8xf32> to vector<8xf32>
    %58 = vector.shape_cast %57 : vector<8xf32> to vector<8x1xf32>
    %59 = vector.broadcast %58 : vector<8x1xf32> to vector<8x8xf32>
    %60 = arith.subf %56, %59 : vector<8x8xf32>
    %61 = math.exp %60 : vector<8x8xf32>
    %cst_55 = arith.constant dense<0.000000e+00> : vector<8xf32>
    %62 = vector.multi_reduction <add>, %61, %cst_55 [1] : vector<8x8xf32> to vector<8xf32>
    %63 = vector.shape_cast %62 : vector<8xf32> to vector<8x1xf32>
    %64 = tpu.reciprocal %63 {approx = true} : vector<8x1xf32> -> vector<8x1xf32>
    %65 = vector.broadcast %64 : vector<8x1xf32> to vector<8x8xf32>
    %66 = arith.mulf %61, %65 : vector<8x8xf32>
    %67 = arith.truncf %66 : vector<8x8xf32> to vector<8x8xbf16>
    %cst_56 = arith.constant dense<0.000000e+00> : vector<8x8xf32>
    %68 = tpu.matmul %67, %55, %cst_56 {dimension_numbers = #tpu.dot_dimension_numbers<[1], [0], [0], [1], [0, 0, 1, 1], [], []>} : vector<8x8xbf16>, vector<8x8xbf16>, vector<8x8xf32> -> vector<8x8xf32>
    %69 = vector.extract_strided_slice %41 {offsets = [0, 8], sizes = [8, 8], strides = [1, 1]} : vector<8x32xf32> to vector<8x8xf32>
    %70 = arith.truncf %69 : vector<8x8xf32> to vector<8x8xbf16>
    %71 = vector.extract_strided_slice %45 {offsets = [0, 8], sizes = [8, 8], strides = [1, 1]} : vector<8x32xf32> to vector<8x8xf32>
    %72 = arith.truncf %71 : vector<8x8xf32> to vector<8x8xbf16>
    %73 = vector.extract_strided_slice %49 {offsets = [0, 8], sizes = [8, 8], strides = [1, 1]} : vector<8x32xf32> to vector<8x8xf32>
    %74 = arith.truncf %73 : vector<8x8xf32> to vector<8x8xbf16>
    %cst_57 = arith.constant dense<0.000000e+00> : vector<8x8xf32>
    %75 = tpu.matmul %70, %72, %cst_57 {dimension_numbers = #tpu.dot_dimension_numbers<[1], [1], [0], [0], [0, 0, 1, 0], [], []>} : vector<8x8xbf16>, vector<8x8xbf16>, vector<8x8xf32> -> vector<8x8xf32>
    %cst_58 = arith.constant dense<0xFF800000> : vector<8xf32>
    %76 = vector.multi_reduction <maximumf>, %75, %cst_58 [1] : vector<8x8xf32> to vector<8xf32>
    %77 = vector.shape_cast %76 : vector<8xf32> to vector<8x1xf32>
    %78 = vector.broadcast %77 : vector<8x1xf32> to vector<8x8xf32>
    %79 = arith.subf %75, %78 : vector<8x8xf32>
    %80 = math.exp %79 : vector<8x8xf32>
    %cst_59 = arith.constant dense<0.000000e+00> : vector<8xf32>
    %81 = vector.multi_reduction <add>, %80, %cst_59 [1] : vector<8x8xf32> to vector<8xf32>
    %82 = vector.shape_cast %81 : vector<8xf32> to vector<8x1xf32>
    %83 = tpu.reciprocal %82 {approx = true} : vector<8x1xf32> -> vector<8x1xf32>
    %84 = vector.broadcast %83 : vector<8x1xf32> to vector<8x8xf32>
    %85 = arith.mulf %80, %84 : vector<8x8xf32>
    %86 = arith.truncf %85 : vector<8x8xf32> to vector<8x8xbf16>
    %cst_60 = arith.constant dense<0.000000e+00> : vector<8x8xf32>
    %87 = tpu.matmul %86, %74, %cst_60 {dimension_numbers = #tpu.dot_dimension_numbers<[1], [0], [0], [1], [0, 0, 1, 1], [], []>} : vector<8x8xbf16>, vector<8x8xbf16>, vector<8x8xf32> -> vector<8x8xf32>
    %88 = vector.extract_strided_slice %41 {offsets = [0, 16], sizes = [8, 8], strides = [1, 1]} : vector<8x32xf32> to vector<8x8xf32>
    %89 = arith.truncf %88 : vector<8x8xf32> to vector<8x8xbf16>
    %90 = vector.extract_strided_slice %45 {offsets = [0, 16], sizes = [8, 8], strides = [1, 1]} : vector<8x32xf32> to vector<8x8xf32>
    %91 = arith.truncf %90 : vector<8x8xf32> to vector<8x8xbf16>
    %92 = vector.extract_strided_slice %49 {offsets = [0, 16], sizes = [8, 8], strides = [1, 1]} : vector<8x32xf32> to vector<8x8xf32>
    %93 = arith.truncf %92 : vector<8x8xf32> to vector<8x8xbf16>
    %cst_61 = arith.constant dense<0.000000e+00> : vector<8x8xf32>
    %94 = tpu.matmul %89, %91, %cst_61 {dimension_numbers = #tpu.dot_dimension_numbers<[1], [1], [0], [0], [0, 0, 1, 0], [], []>} : vector<8x8xbf16>, vector<8x8xbf16>, vector<8x8xf32> -> vector<8x8xf32>
    %cst_62 = arith.constant dense<0xFF800000> : vector<8xf32>
    %95 = vector.multi_reduction <maximumf>, %94, %cst_62 [1] : vector<8x8xf32> to vector<8xf32>
    %96 = vector.shape_cast %95 : vector<8xf32> to vector<8x1xf32>
    %97 = vector.broadcast %96 : vector<8x1xf32> to vector<8x8xf32>
    %98 = arith.subf %94, %97 : vector<8x8xf32>
    %99 = math.exp %98 : vector<8x8xf32>
    %cst_63 = arith.constant dense<0.000000e+00> : vector<8xf32>
    %100 = vector.multi_reduction <add>, %99, %cst_63 [1] : vector<8x8xf32> to vector<8xf32>
    %101 = vector.shape_cast %100 : vector<8xf32> to vector<8x1xf32>
    %102 = tpu.reciprocal %101 {approx = true} : vector<8x1xf32> -> vector<8x1xf32>
    %103 = vector.broadcast %102 : vector<8x1xf32> to vector<8x8xf32>
    %104 = arith.mulf %99, %103 : vector<8x8xf32>
    %105 = arith.truncf %104 : vector<8x8xf32> to vector<8x8xbf16>
    %cst_64 = arith.constant dense<0.000000e+00> : vector<8x8xf32>
    %106 = tpu.matmul %105, %93, %cst_64 {dimension_numbers = #tpu.dot_dimension_numbers<[1], [0], [0], [1], [0, 0, 1, 1], [], []>} : vector<8x8xbf16>, vector<8x8xbf16>, vector<8x8xf32> -> vector<8x8xf32>
    %107 = vector.extract_strided_slice %41 {offsets = [0, 24], sizes = [8, 8], strides = [1, 1]} : vector<8x32xf32> to vector<8x8xf32>
    %108 = arith.truncf %107 : vector<8x8xf32> to vector<8x8xbf16>
    %109 = vector.extract_strided_slice %45 {offsets = [0, 24], sizes = [8, 8], strides = [1, 1]} : vector<8x32xf32> to vector<8x8xf32>
    %110 = arith.truncf %109 : vector<8x8xf32> to vector<8x8xbf16>
    %111 = vector.extract_strided_slice %49 {offsets = [0, 24], sizes = [8, 8], strides = [1, 1]} : vector<8x32xf32> to vector<8x8xf32>
    %112 = arith.truncf %111 : vector<8x8xf32> to vector<8x8xbf16>
    %cst_65 = arith.constant dense<0.000000e+00> : vector<8x8xf32>
    %113 = tpu.matmul %108, %110, %cst_65 {dimension_numbers = #tpu.dot_dimension_numbers<[1], [1], [0], [0], [0, 0, 1, 0], [], []>} : vector<8x8xbf16>, vector<8x8xbf16>, vector<8x8xf32> -> vector<8x8xf32>
    %cst_66 = arith.constant dense<0xFF800000> : vector<8xf32>
    %114 = vector.multi_reduction <maximumf>, %113, %cst_66 [1] : vector<8x8xf32> to vector<8xf32>
    %115 = vector.shape_cast %114 : vector<8xf32> to vector<8x1xf32>
    %116 = vector.broadcast %115 : vector<8x1xf32> to vector<8x8xf32>
    %117 = arith.subf %113, %116 : vector<8x8xf32>
    %118 = math.exp %117 : vector<8x8xf32>
    %cst_67 = arith.constant dense<0.000000e+00> : vector<8xf32>
    %119 = vector.multi_reduction <add>, %118, %cst_67 [1] : vector<8x8xf32> to vector<8xf32>
    %120 = vector.shape_cast %119 : vector<8xf32> to vector<8x1xf32>
    %121 = tpu.reciprocal %120 {approx = true} : vector<8x1xf32> -> vector<8x1xf32>
    %122 = vector.broadcast %121 : vector<8x1xf32> to vector<8x8xf32>
    %123 = arith.mulf %118, %122 : vector<8x8xf32>
    %124 = arith.truncf %123 : vector<8x8xf32> to vector<8x8xbf16>
    %cst_68 = arith.constant dense<0.000000e+00> : vector<8x8xf32>
    %125 = tpu.matmul %124, %112, %cst_68 {dimension_numbers = #tpu.dot_dimension_numbers<[1], [0], [0], [1], [0, 0, 1, 1], [], []>} : vector<8x8xbf16>, vector<8x8xbf16>, vector<8x8xf32> -> vector<8x8xf32>
    %126 = tpu.concatenate %68, %87, %106, %125 in 1 : vector<8x8xf32>, vector<8x8xf32>, vector<8x8xf32>, vector<8x8xf32> -> vector<8x32xf32>
    %127 = arith.truncf %126 : vector<8x32xf32> to vector<8x32xbf16>
    %cst_69 = arith.constant dense<0.000000e+00> : vector<8x32xf32>
    %128 = tpu.matmul %127, %16, %cst_69 {dimension_numbers = #tpu.dot_dimension_numbers<[1], [1], [0], [0], [0, 0, 1, 0], [], []>} : vector<8x32xbf16>, vector<32x32xbf16>, vector<8x32xf32> -> vector<8x32xf32>
    %129 = vector.broadcast %18 : vector<1x32xf32> to vector<8x32xf32>
    %130 = arith.addf %128, %129 : vector<8x32xf32>
    %131 = arith.addf %35, %130 : vector<8x32xf32>
    %cst_70 = arith.constant dense<0.000000e+00> : vector<8xf32>
    %132 = vector.multi_reduction <add>, %131, %cst_70 [1] : vector<8x32xf32> to vector<8xf32>
    %133 = vector.shape_cast %132 : vector<8xf32> to vector<8x1xf32>
    %cst_71 = arith.constant 3.200000e+01 : f32
    %134 = vector.broadcast %cst_71 : f32 to vector<8x1xf32>
    %135 = arith.divf %133, %134 : vector<8x1xf32>
    %136 = vector.broadcast %135 : vector<8x1xf32> to vector<8x32xf32>
    %137 = arith.subf %131, %136 : vector<8x32xf32>
    %138 = arith.mulf %137, %137 : vector<8x32xf32>
    %cst_72 = arith.constant dense<0.000000e+00> : vector<8xf32>
    %139 = vector.multi_reduction <add>, %138, %cst_72 [1] : vector<8x32xf32> to vector<8xf32>
    %140 = vector.shape_cast %139 : vector<8xf32> to vector<8x1xf32>
    %cst_73 = arith.constant 3.200000e+01 : f32
    %141 = vector.broadcast %cst_73 : f32 to vector<8x1xf32>
    %142 = arith.divf %140, %141 : vector<8x1xf32>
    %143 = vector.broadcast %135 : vector<8x1xf32> to vector<8x32xf32>
    %144 = arith.subf %131, %143 : vector<8x32xf32>
    %cst_74 = arith.constant 9.99999974E-6 : f32
    %145 = vector.broadcast %cst_74 : f32 to vector<8x1xf32>
    %146 = arith.addf %142, %145 : vector<8x1xf32>
    %147 = math.rsqrt %146 : vector<8x1xf32>
    %148 = vector.broadcast %147 : vector<8x1xf32> to vector<8x32xf32>
    %149 = arith.mulf %144, %148 : vector<8x32xf32>
    %150 = vector.broadcast %28 : vector<1x32xf32> to vector<8x32xf32>
    %151 = arith.mulf %149, %150 : vector<8x32xf32>
    %152 = vector.broadcast %30 : vector<1x32xf32> to vector<8x32xf32>
    %153 = arith.addf %151, %152 : vector<8x32xf32>
    %154 = arith.truncf %153 : vector<8x32xf32> to vector<8x32xbf16>
    %cst_75 = arith.constant dense<0.000000e+00> : vector<8x64xf32>
    %155 = tpu.matmul %154, %20, %cst_75 {dimension_numbers = #tpu.dot_dimension_numbers<[1], [1], [0], [0], [0, 0, 1, 0], [], []>} : vector<8x32xbf16>, vector<64x32xbf16>, vector<8x64xf32> -> vector<8x64xf32>
    %156 = vector.broadcast %22 : vector<1x64xf32> to vector<8x64xf32>
    %157 = arith.addf %155, %156 : vector<8x64xf32>
    %cst_76 = arith.constant 0.000000e+00 : f32
    %158 = vector.broadcast %cst_76 : f32 to vector<8x64xf32>
    %159 = arith.maximumf %157, %158 : vector<8x64xf32>
    %160 = arith.truncf %159 : vector<8x64xf32> to vector<8x64xbf16>
    %cst_77 = arith.constant dense<0.000000e+00> : vector<8x32xf32>
    %161 = tpu.matmul %160, %24, %cst_77 {dimension_numbers = #tpu.dot_dimension_numbers<[1], [1], [0], [0], [0, 0, 1, 0], [], []>} : vector<8x64xbf16>, vector<32x64xbf16>, vector<8x32xf32> -> vector<8x32xf32>
    %162 = vector.broadcast %26 : vector<1x32xf32> to vector<8x32xf32>
    %163 = arith.addf %161, %162 : vector<8x32xf32>
    %164 = arith.addf %153, %163 : vector<8x32xf32>
    %cst_78 = arith.constant dense<0.000000e+00> : vector<8xf32>
    %165 = vector.multi_reduction <add>, %164, %cst_78 [1] : vector<8x32xf32> to vector<8xf32>
    %166 = vector.shape_cast %165 : vector<8xf32> to vector<8x1xf32>
    %cst_79 = arith.constant 3.200000e+01 : f32
    %167 = vector.broadcast %cst_79 : f32 to vector<8x1xf32>
    %168 = arith.divf %166, %167 : vector<8x1xf32>
    %169 = vector.broadcast %168 : vector<8x1xf32> to vector<8x32xf32>
    %170 = arith.subf %164, %169 : vector<8x32xf32>
    %171 = arith.mulf %170, %170 : vector<8x32xf32>
    %cst_80 = arith.constant dense<0.000000e+00> : vector<8xf32>
    %172 = vector.multi_reduction <add>, %171, %cst_80 [1] : vector<8x32xf32> to vector<8xf32>
    %173 = vector.shape_cast %172 : vector<8xf32> to vector<8x1xf32>
    %cst_81 = arith.constant 3.200000e+01 : f32
    %174 = vector.broadcast %cst_81 : f32 to vector<8x1xf32>
    %175 = arith.divf %173, %174 : vector<8x1xf32>
    %176 = vector.broadcast %168 : vector<8x1xf32> to vector<8x32xf32>
    %177 = arith.subf %164, %176 : vector<8x32xf32>
    %cst_82 = arith.constant 9.99999974E-6 : f32
    %178 = vector.broadcast %cst_82 : f32 to vector<8x1xf32>
    %179 = arith.addf %175, %178 : vector<8x1xf32>
    %180 = math.rsqrt %179 : vector<8x1xf32>
    %181 = vector.broadcast %180 : vector<8x1xf32> to vector<8x32xf32>
    %182 = arith.mulf %177, %181 : vector<8x32xf32>
    %183 = vector.broadcast %32 : vector<1x32xf32> to vector<8x32xf32>
    %184 = arith.mulf %182, %183 : vector<8x32xf32>
    %185 = vector.broadcast %34 : vector<1x32xf32> to vector<8x32xf32>
    %186 = arith.addf %184, %185 : vector<8x32xf32>
    %c0_83 = arith.constant 0 : index
    %c0_84 = arith.constant 0 : index
    %187 = vector.load %arg19[%c0_83, %c0_84] : memref<8x32xf32, #tpu.memory_space<vmem>>, vector<8x32xf32>
    tpu.vector_store %arg19[%c0_83, %c0_84], %186 {strides = array<i32>} : memref<8x32xf32, #tpu.memory_space<vmem>>, vector<8x32xf32>,
    return
  }
  func.func @transform_0(%arg0: i32, %arg1: i32) -> (i32, i32) {
    %c0_i32 = arith.constant 0 : i32
    %c0_i32_0 = arith.constant 0 : i32
    return %arg0, %c0_i32 : i32, i32
  }
  func.func @transform_1(%arg0: i32, %arg1: i32) -> (i32, i32, i32) {
    %c0_i32 = arith.constant 0 : i32
    %c0_i32_0 = arith.constant 0 : i32
    %c0_i32_1 = arith.constant 0 : i32
    return %arg1, %c0_i32, %c0_i32_0 : i32, i32, i32
  }
  func.func @transform_2(%arg0: i32, %arg1: i32) -> (i32, i32, i32) {
    %c0_i32 = arith.constant 0 : i32
    %c0_i32_0 = arith.constant 0 : i32
    %c0_i32_1 = arith.constant 0 : i32
    return %arg1, %c0_i32, %c0_i32_0 : i32, i32, i32
  }
  func.func @transform_3(%arg0: i32, %arg1: i32) -> (i32, i32, i32) {
    %c0_i32 = arith.constant 0 : i32
    %c0_i32_0 = arith.constant 0 : i32
    %c0_i32_1 = arith.constant 0 : i32
    return %arg1, %c0_i32, %c0_i32_0 : i32, i32, i32
  }
  func.func @transform_4(%arg0: i32, %arg1: i32) -> (i32, i32, i32) {
    %c0_i32 = arith.constant 0 : i32
    %c0_i32_0 = arith.constant 0 : i32
    %c0_i32_1 = arith.constant 0 : i32
    return %arg1, %c0_i32, %c0_i32_0 : i32, i32, i32
  }
  func.func @transform_5(%arg0: i32, %arg1: i32) -> (i32, i32, i32) {
    %c0_i32 = arith.constant 0 : i32
    %c0_i32_0 = arith.constant 0 : i32
    %c0_i32_1 = arith.constant 0 : i32
    return %arg1, %c0_i32, %c0_i32_0 : i32, i32, i32
  }
  func.func @transform_6(%arg0: i32, %arg1: i32) -> (i32, i32, i32) {
    %c0_i32 = arith.constant 0 : i32
    %c0_i32_0 = arith.constant 0 : i32
    %c0_i32_1 = arith.constant 0 : i32
    return %arg1, %c0_i32, %c0_i32_0 : i32, i32, i32
  }
  func.func @transform_7(%arg0: i32, %arg1: i32) -> (i32, i32, i32) {
    %c0_i32 = arith.constant 0 : i32
    %c0_i32_0 = arith.constant 0 : i32
    %c0_i32_1 = arith.constant 0 : i32
    return %arg1, %c0_i32, %c0_i32_0 : i32, i32, i32
  }
  func.func @transform_8(%arg0: i32, %arg1: i32) -> (i32, i32, i32) {
    %c0_i32 = arith.constant 0 : i32
    %c0_i32_0 = arith.constant 0 : i32
    %c0_i32_1 = arith.constant 0 : i32
    return %arg1, %c0_i32, %c0_i32_0 : i32, i32, i32
  }
  func.func @transform_9(%arg0: i32, %arg1: i32) -> (i32, i32, i32) {
    %c0_i32 = arith.constant 0 : i32
    %c0_i32_0 = arith.constant 0 : i32
    %c0_i32_1 = arith.constant 0 : i32
    return %arg1, %c0_i32, %c0_i32_0 : i32, i32, i32
  }
  func.func @transform_10(%arg0: i32, %arg1: i32) -> (i32, i32, i32) {
    %c0_i32 = arith.constant 0 : i32
    %c0_i32_0 = arith.constant 0 : i32
    %c0_i32_1 = arith.constant 0 : i32
    return %arg1, %c0_i32, %c0_i32_0 : i32, i32, i32
  }
  func.func @transform_11(%arg0: i32, %arg1: i32) -> (i32, i32, i32) {
    %c0_i32 = arith.constant 0 : i32
    %c0_i32_0 = arith.constant 0 : i32
    %c0_i32_1 = arith.constant 0 : i32
    return %arg1, %c0_i32, %c0_i32_0 : i32, i32, i32
  }
  func.func @transform_12(%arg0: i32, %arg1: i32) -> (i32, i32, i32) {
    %c0_i32 = arith.constant 0 : i32
    %c0_i32_0 = arith.constant 0 : i32
    %c0_i32_1 = arith.constant 0 : i32
    return %arg1, %c0_i32, %c0_i32_0 : i32, i32, i32
  }
  func.func @transform_13(%arg0: i32, %arg1: i32) -> (i32, i32, i32) {
    %c0_i32 = arith.constant 0 : i32
    %c0_i32_0 = arith.constant 0 : i32
    %c0_i32_1 = arith.constant 0 : i32
    return %arg1, %c0_i32, %c0_i32_0 : i32, i32, i32
  }
  func.func @transform_14(%arg0: i32, %arg1: i32) -> (i32, i32, i32) {
    %c0_i32 = arith.constant 0 : i32
    %c0_i32_0 = arith.constant 0 : i32
    %c0_i32_1 = arith.constant 0 : i32
    return %arg1, %c0_i32, %c0_i32_0 : i32, i32, i32
  }
  func.func @transform_15(%arg0: i32, %arg1: i32) -> (i32, i32, i32) {
    %c0_i32 = arith.constant 0 : i32
    %c0_i32_0 = arith.constant 0 : i32
    %c0_i32_1 = arith.constant 0 : i32
    return %arg1, %c0_i32, %c0_i32_0 : i32, i32, i32
  }
  func.func @transform_16(%arg0: i32, %arg1: i32) -> (i32, i32, i32) {
    %c0_i32 = arith.constant 0 : i32
    %c0_i32_0 = arith.constant 0 : i32
    %c0_i32_1 = arith.constant 0 : i32
    return %arg1, %c0_i32, %c0_i32_0 : i32, i32, i32
  }
  func.func @transform_17(%arg0: i32, %arg1: i32) -> (i32, i32) {
    %c0_i32 = arith.constant 0 : i32
    %c0_i32_0 = arith.constant 0 : i32
    return %arg0, %c0_i32 : i32, i32
  }
}

</mosaic_0001>

<bundles_post_ra>
// kernel: tpu_custom_call.1
= control target key start
LH: loop header
LB: loop body
LE: loop exit
PB: predicated region body
PF: predicated region fallthrough
CT: control target
= control target key end

     0   :  { %s3018_s0 = inlined_call_operand.hbm [shape: f32[16,32], index: 0, kind: input, shape index: {}]   ;;  %s3019_s1 = inlined_call_operand.vmem [shape: bf16[2,32,32], index: 1, kind: input, shape index: {}]   ;;  %s3020_s2 = inlined_call_operand.hbm [shape: f32[2,1,32], index: 2, kind: input, shape index: {}]   ;;  %s3021_s3 = inlined_call_operand.vmem [shape: bf16[2,32,32], index: 3, kind: input, shape index: {}]   ;;  %s3022_s4 = inlined_call_operand.vmem [shape: f32[2,1,32], index: 4, kind: input, shape index: {}]   ;;  %s3023_s5 = inlined_call_operand.vmem [shape: bf16[2,32,32], index: 5, kind: input, shape index: {}]   ;;  %s3024_s6 = inlined_call_operand.vmem [shape: f32[2,1,32], index: 6, kind: input, shape index: {}]   ;;  %s3025_s7 = inlined_call_operand.hbm [shape: bf16[2,32,32], index: 7, kind: input, shape index: {}]   ;;  %s3026_s8 = inlined_call_operand.vmem [shape: f32[2,1,32], index: 8, kind: input, shape index: {}]   ;;  %s3027_s9 = inlined_call_operand.vmem [shape: bf16[2,64,32], index: 9, kind: input, shape index: {}]   ;;  %s3028_s10 = inlined_call_operand.vmem [shape: f32[2,1,64], index: 10, kind: input, shape index: {}]   ;;  %s3029_s11 = inlined_call_operand.hbm [shape: bf16[2,32,64], index: 11, kind: input, shape index: {}]   ;;  %s3030_s12 = inlined_call_operand.vmem [shape: f32[2,1,32], index: 12, kind: input, shape index: {}]   ;;  %s3031_s13 = inlined_call_operand.hbm [shape: f32[2,1,32], index: 13, kind: input, shape index: {}]   ;;  %s3032_s14 = inlined_call_operand.vmem [shape: f32[2,1,32], index: 14, kind: input, shape index: {}]   ;;  %s3033_s15 = inlined_call_operand.hbm [shape: f32[2,1,32], index: 15, kind: input, shape index: {}]   ;;  %s3034_s16 = inlined_call_operand.vmem [shape: f32[2,1,32], index: 16, kind: input, shape index: {}]   ;;  %s3035_s17 = inlined_call_operand.hbm [shape: f32[16,32], index: 17, kind: output, shape index: {}]  }
   0x1   :  { %3056 = sst [smem:[#allocation36_spill]] %s3018_s0 }
   0x2   :  { %3057 = sst [smem:[#allocation37_spill]] %s3019_s1 }
   0x3   :  { %3058 = sst [smem:[#allocation38_spill]] %s3020_s2 }
   0x4   :  { %3059 = sst [smem:[#allocation39_spill]] %s3021_s3 }
   0x5   :  { %3060 = sst [smem:[#allocation40_spill]] %s3022_s4 }
   0x6   :  { %3061 = sst [smem:[#allocation41_spill]] %s3023_s5 }
   0x7   :  { %3062 = sst [smem:[#allocation42_spill]] %s3024_s6 }
   0x8   :  { %3063 = sst [smem:[#allocation43_spill]] %s3025_s7 }
   0x9   :  { %3064 = sst [smem:[#allocation44_spill]] %s3026_s8 }
   0xa   :  { %3065 = sst [smem:[#allocation45_spill]] %s3027_s9 }
   0xb   :  { %3066 = sst [smem:[#allocation46_spill]] %s3028_s10 }
   0xc   :  { %3067 = sst [smem:[#allocation47_spill]] %s3029_s11 }
   0xd   :  { %3068 = sst [smem:[#allocation48_spill]] %s3030_s12 }
   0xe   :  { %3069 = sst [smem:[#allocation49_spill]] %s3031_s13 }
   0xf   :  { %3070 = sst [smem:[#allocation50_spill]] %s3032_s14 }
  0x10   :  { %3071 = sst [smem:[#allocation51_spill]] %s3033_s15 }
  0x11   :  { %3072 = sst [smem:[#allocation52_spill]] %s3034_s16 }
  0x12   :  { %3073 = sst [smem:[#allocation53_spill]] %s3035_s17 }
  0x13   :  { %22 = vsyncpa [#allocation3], 0 }
  0x14   :  { %24 = vsyncpa [#allocation3 + $0x1], 0 }
  0x15   :  { %25 = vsyncpa [#allocation6], 0 }
  0x16   :  { %27 = vsyncpa [#allocation6 + $0x1], 0 }
  0x17   :  { %28 = vsyncpa [#allocation9], 0 }
  0x18   :  { %30 = vsyncpa [#allocation9 + $0x1], 0 }
  0x19   :  { %31 = vsyncpa [#allocation12], 0 }
  0x1a   :  { %33 = vsyncpa [#allocation12 + $0x1], 0 }
  0x1b   :  { %34 = vsyncpa [#allocation4], 0 }
  0x1c   :  { %36 = vsyncpa [#allocation4 + $0x1], 0  ;;  %s2535_s24 = smov 0   ;;  %s2537_s25 = smov 0  }
  0x1d   :  { %s2539_s26 = smov 0   ;;  %s2541_s27 = smov 0  }
  0x1e   :  { %s2543_s28 = smov 0   ;;  %s2545_s29 = smov 0  }
  0x1f   :  { %s2547_s0 = smov 0   ;;  %s2549_s30 = smov 0  }
  0x20   :  { %s2551_s18 = smov 0   ;;  %s2553_s19 = smov 0  }
  0x21   :  { %s2555_s1 = smov 0  }
  0x22 LB: > { %3074 = sst [smem:[#allocation19_spill]] %s2398_s25  ;;  %p69_p0 = scmp.eq.s32.totalorder %s2434_s1, 0  ;;  %s2434_s1 = sphi %s2555_s1, %s42_s1   ;;  %s2430_s19 = sphi %s2553_s19, %s3149_s19   ;;  %s2426_s18 = sphi %s2551_s18, %s3148_s18   ;;  %s2422_s30 = sphi %s2549_s30, %s3147_s30   ;;  %s2418_s0 = sphi %s2547_s0, %s3146_s0   ;;  %s2414_s29 = sphi %s2545_s29, %s3145_s29   ;;  %s2410_s28 = sphi %s2543_s28, %s3144_s28   ;;  %s2406_s27 = sphi %s2541_s27, %s3143_s27   ;;  %s2402_s26 = sphi %s2539_s26, %s3142_s26   ;;  %s2398_s25 = sphi %s2537_s25, %s3141_s25   ;;  %s2394_s24 = sphi %s2535_s24, %s3140_s24  }
  0x23   : > { %3075 = sst [smem:[#allocation20_spill]] %s2402_s26  ;;  %p120_p1 = scmp.ne.s32.totalorder %s2402_s26, %s2398_s25 }
  0x24   : > { %3076 = sst [smem:[#allocation21_spill]] %s2406_s27  ;;  %p126_p2 = scmp.ne.s32.totalorder %s2398_s25, %s2394_s24 }
  0x25   : > { %3077 = sst [smem:[#allocation22_spill]] %s2410_s28  ;;  %p1989_p3 = scmp.lt.s32.totalorder %s2434_s1, 4 }
  0x26   : > { %3078 = sst [smem:[#allocation23_spill]] %s2414_s29  ;;  %p122_p4 = por %p120_p1, %p69_p0 }
  0x27   : > { %3079 = sst [smem:[#allocation24_spill]] %s2418_s0  ;;  %s567_s21 = sand.u32 1, %s2434_s1  }
  0x28   : > { %3080 = sst [smem:[#allocation25_spill]] %s2422_s30  ;;  %s2601_s22 = sand.u32 1, %s2402_s26  }
  0x29   : > { %3081 = sst [smem:[#allocation26_spill]] %s2426_s18  ;;  %s570_s14 = scalar_lea.vmem [#allocation5], %s2601_s22 }
  0x2a   : > { %3082 = sst [smem:[#allocation27_spill]] %s2430_s19  ;;  %s577_s12 = sshll.u32 %s570_s14, 4  ;;  %s578_s12 = int_to_ptr.vmem [resolvable:$true] %s577_s12 }
  0x2b   : > { %3083 = sst [smem:[#allocation28_spill]] %s2434_s1  ;;  %p2610_p5 = pnand %p1989_p3, %p122_p4 }
  0x2c   : > { %s3084_s2 = sld [smem:[#allocation38_spill]]  ;;  %p1844_p6 = scmp.ge.s32.totalorder %s2434_s1, 1 }
  0x2d   : > { %p726_p7 = scmp.lt.s32.totalorder %s2434_s1, 5  ;;  %s1838_s10 = sshll.u32 %s2601_s22, 4 }
  0x2e   : > { %s2617_s9 = scalar_lea.sflag [#allocation6], %s567_s21  ;;  %s1932_s14 = sshll.u32 %s2426_s18, 4 }
  0x2f   : > { %p2622_p8 = pnand %p1844_p6, %p726_p7  ;;  %s3087_s7 = sld [smem:[#allocation43_spill]] }
  0x30   : > { %s3088_s11 = sld [smem:[#allocation47_spill]]  ;;  %p68_p10 = scmp.ne.s32.totalorder %s2414_s29, %s2410_s28 }
  0x31   : > { %p74_p11 = scmp.ne.s32.totalorder %s2410_s28, %s2406_s27  ;;  %s3103_s27 = smov 64  }
  0x32   : > { %s573_s30 = scalar_lea.hbm %s3084_s2, %s2426_s18  ;;  %s658_s2 = scalar_lea.vmem [#allocation8], %s1838_s10 }
  0x33   : > { %s575_s16 = sshll.u32 %s573_s30, 4  ;;  %s616_s30 = scalar_lea.vmem [#allocation7], %s1838_s10  ;;  %s576_s16 = int_to_ptr.hbm [resolvable:$true] %s575_s16 }
  0x34   : > { %1972 = dma.hbm_to_vmem [thread:$0]  (!%p2610_p5), %s576_s16, 16, %s578_s12, %s2617_s9  }
  0x35   : > { %s624_s23 = sshll.u32 %s616_s30, 4  ;;  %s621_s6 = scalar_lea.hbm %s3087_s7, %s1932_s14  ;;  %s2630_s23 = int_to_ptr.vmem [resolvable:$true] %s624_s23 }
  0x36   : > { %s622_s5 = sshll.u32 %s621_s6, 4  ;;  %s663_s3 = scalar_lea.hbm %s3088_s11, %s1932_s14  ;;  %s2632_s5 = int_to_ptr.hbm [resolvable:$true] %s622_s5 }
  0x37   : > { %s664_s30 = sshll.u32 %s663_s3, 4  ;;  %s666_s8 = sshll.u32 %s658_s2, 4  ;;  %s665_s30 = int_to_ptr.hbm [resolvable:$true] %s664_s30  ;;  %s667_s8 = int_to_ptr.vmem [resolvable:$true] %s666_s8 }
  0x38   : > { %s2637_s6 = scalar_lea.sflag [#allocation9], %s567_s21  ;;  %s3037_s7 = smov 64  }
  0x39   : > { %s3038_s12 = smov 4   ;;  %s2646_s3 = sadd.s32 4294967295, %s2434_s1  }
  0x3a   : > { %1978 = dma.hbm_to_vmem [thread:$0]  (!%p2610_p5), %s665_s30, 256, %s667_s8, %s2637_s6, %s3037_s7, %s3037_s7, %s3038_s12  }
  0x3b   : > { %s1833_s10 = sadd.s32 4294967294, %s2434_s1   ;;  %s51_s14 = sadd.s32 1, %s2426_s18 }
  0x3c   : > { %s54_s21 = sadd.s32 1, %s2430_s19  ;;  %p52_p9 = scmp.ge.s32.totalorder %s51_s14, 2 }
  0x3d   : > { %s61_s16 = sadd.s32 1, %s2414_s29  ;;  %p2664_p12 = por %p69_p0, %p68_p10 }
  0x3e   : > { %s3151_s14 = smov (%p52_p9, %s51_s14), 0  ;;  %s3153_s21 = smov (!%p52_p9, %s54_s21), %s2430_s19 }
  0x3f   : > { %3089 = sst [smem:[#allocation29_spill]] %s3151_s14  ;;  %p75_p13 = scmp.eq.s32.totalorder %s2646_s3, 0 }
  0x40   : > { %p56_p1 = scmp.ge.s32.totalorder %s3153_s21, 2  ;;  %s110_s2 = ssub.s32 %s2426_s18, %s3151_s14 }
  0x41   : > { %p2674_p4 = por %p75_p13, %p74_p11  ;;  %p111_p6 = scmp.eq.s32.totalorder %s110_s2, 0 }
  0x42   : > { %s3155_s21 = smov (%p56_p1, %s3153_s21), 0  ;;  %s3093_s7 = sadd.s32 1, %s2402_s26 }
  0x43   : > { %3092 = sst [smem:[#allocation30_spill]] %s3155_s21  ;;  %s58_s11 = ssub.s32 %s2430_s19, %s3155_s21 }
  0x44   : > { %s2683_s12 = scalar_select %p111_p6, %s2402_s26, %s3093_s7  }
  0x45   : > { %p2690_p0 = por %p126_p2, %p75_p13  ;;  %p59_p7 = scmp.eq.s32.totalorder %s58_s11, 0 }
  0x46   : > { %3094 = sst [smem:[#allocation31_spill]] %s2683_s12  ;;  %p514_p9 = scmp.eq.s32.totalorder %s2646_s3, 3 }
  0x47   : > { %p520_p1 = scmp.eq.s32.totalorder %s1833_s10, 3  ;;  %s540_s2 = sand.u32 1, %s2414_s29  }
  0x48   : > { %s2697_s14 = scalar_select %p59_p7, %s2414_s29, %s61_s16  }
  0x49   : > { %p2702_p6 = por %p514_p9, %p68_p10  ;;  %p2709_p2 = por %p520_p1, %p74_p11 }
  0x4a   : > { %3096 = sst [smem:[#allocation32_spill]] %s2697_s14  ;;  %s1836_s11 = sshll.u32 %s540_s2, 3 }
  0x4b   : > { %s3097_s7 = scalar_select %p2702_p6, 1, 0 }
  0x4c   : > { %s3099_s24 = scalar_select %p2709_p2, 1, 0 }
  0x4d   : > { %3098 = sst [smem:[#allocation33_spill]] %s3097_s7  ;;  %s1837_s21 = sshll.u32 %s2430_s19, 3 }
  0x4e   : > { %3100 = sst [smem:[#allocation34_spill]] %s3099_s24  ;;  %s544_s16 = scalar_lea.vmem [#allocation2], %s1836_s11 }
  0x4f   : > { %s3101_s10 = sld [smem:[#allocation36_spill]]  ;;  %s552_s14 = sshll.u32 %s544_s16, 4  ;;  %s553_s14 = int_to_ptr.vmem [resolvable:$true] %s552_s14 }
  0x50   : > { %p1967_p10 = pnand %p1989_p3, %p2664_p12  ;;  %s3102_s24 = smov 4  }
  0x51   : > { %1975 = dma.hbm_to_vmem [thread:$0]  (!%p2610_p5), %s2632_s5, 256, %s2630_s23, %s2617_s9, %s3103_s27, %s3103_s27, %s3102_s24  }
  0x52   : > { %s541_s26 = scalar_lea.sflag [#allocation3], %s540_s2  ;;  %s3104_s13 = sld [smem:[#allocation49_spill]] }
  0x53   : > { %s3105_s15 = sld [smem:[#allocation51_spill]]  ;;  %s708_s9 = scalar_lea.vmem [#allocation11], %s2601_s22 }
  0x54   : > { %s715_s27 = sshll.u32 %s708_s9, 4  ;;  %s716_s27 = int_to_ptr.vmem [resolvable:$true] %s715_s27 }
  0x55   : > { %s548_s0 = scalar_lea.hbm %s3101_s10, %s1837_s21 }
  0x56   : > { %s550_s29 = sshll.u32 %s548_s0, 4  ;;  %s685_s0 = scalar_lea.vmem [#allocation10], %s2601_s22  ;;  %s551_s29 = int_to_ptr.hbm [resolvable:$true] %s550_s29 }
  0x57   : > { %1969 = dma.hbm_to_vmem [thread:$0]  (!%p1967_p10), %s551_s29, 128, %s553_s14, %s541_s26  }
  0x58   : > { %s688_s11 = scalar_lea.hbm %s3104_s13, %s2426_s18  ;;  %s692_s10 = sshll.u32 %s685_s0, 4  ;;  %s693_s10 = int_to_ptr.vmem [resolvable:$true] %s692_s10 }
  0x59   : > { %s690_s16 = sshll.u32 %s688_s11, 4  ;;  %s711_s1 = scalar_lea.hbm %s3105_s15, %s2426_s18  ;;  %s691_s16 = int_to_ptr.hbm [resolvable:$true] %s690_s16 }
  0x5a   : > { %1981 = dma.hbm_to_vmem [thread:$0]  (!%p2610_p5), %s691_s16, 16, %s693_s10, %s2637_s6  }
  0x5b   : > { %s713_s5 = sshll.u32 %s711_s1, 4  ;;  %s706_s29 = scalar_lea.sflag [#allocation12], %s2601_s22  ;;  %s714_s5 = int_to_ptr.hbm [resolvable:$true] %s713_s5 }
  0x5c   : > { %1984 = dma.hbm_to_vmem [thread:$0]  (!%p2610_p5), %s714_s5, 16, %s716_s27, %s706_s29  }
  0x5d   : > { %730 = sbr.rel (%p2622_p8) target bundleno = 2008 (0x7d8), region = 88 }
  0x62   : > { %s2748_s23 = sand.u32 1, %s2410_s28  }
  0x63   : > { %s3049_s19 = sshll.u32 %s2748_s23, 3  ;;  %s733_s6 = scalar_lea.sflag [#allocation3], %s2748_s23 }
  0x64   : > { %s2754_s1 = scalar_lea.vmem [#allocation2], %s3049_s19 }
  0x65   : > { %2373 = dma.done.wait (%p2674_p4), %s733_s6, 128  }
  0x66   : > { %2375 = vsyncadd (%p2674_p4), %s733_s6, 4294967168  ;;  %s742_s20 = sand.u32 1, %s2646_s3   ;;  %s2762_s22 = sand.u32 1, %s2398_s25  }
  0x67   : > { %s743_s17 = scalar_lea.sflag [#allocation6], %s742_s20 }
  0x68   : > { %2377 = dma.done.wait (%p2690_p0), %s743_s17, 272  }
  0x69   : > { %2379 = vsyncadd (%p2690_p0), %s743_s17, 4294967024  ;;  %s1846_s2 = sshll.u32 %s2762_s22, 4  ;;  %s762_s8 = scalar_lea.sflag [#allocation9], %s742_s20 }
  0x6a   : > { %s2770_s24 = scalar_lea.vmem [#allocation7], %s1846_s2  ;;  %s2772_s26 = scalar_lea.vmem [#allocation8], %s1846_s2 }
  0x6b   : > { %3106 = sst [smem:[#allocation35_spill]] %s2772_s26 }
  0x6c   : > { %2381 = dma.done.wait (%p2690_p0), %s762_s8, 272  }
  0x6d   : > { %2383 = vsyncadd (%p2690_p0), %s762_s8, 4294967024  ;;  %s781_s12 = scalar_lea.sflag [#allocation12], %s2762_s22 }
  0x6e   : > { %2385 = dma.done.wait (%p2690_p0), %s781_s12, 16  }
  0x6f   : > { %2387 = vsyncadd (%p2690_p0), %s781_s12, 4294967280  ;;  %s3107_s11 = sld [smem:[#allocation24_spill]]  ;;  %s3119_s26 = sshll.u32 %s2748_s23, 3 }
  0x70   : > { %s3109_s29 = sld [smem:[#allocation37_spill]]  ;;  %s2837_s9 = scalar_lea.vmem [#allocation13], %s3119_s26 }
  0x71   : > { %s3110_s2 = sld [smem:[#allocation39_spill]] }
  0x72   : > { %s3111_s3 = sld [smem:[#allocation41_spill]] }
  0x73   : > { %s3116_s12 = sld [smem:[#allocation48_spill]] }
  0x74   : > { %s3117_s19 = sld [smem:[#allocation50_spill]] }
  0x75   : > { %p898_p3 = scmp.lt.s32.totalorder %s3107_s11, 1  ;;  %s3118_s30 = sld [smem:[#allocation52_spill]] }
  0x76   : > { %p1857_p5 = scmp.ne.s32.totalorder %s3107_s11, 0 }
  0x77   : > { %s2787_s0 = scalar_select %p898_p3, %s3107_s11, 1 }
  0x79   : > { %s1934_s10 = sshll.u32 %s2787_s0, 4  ;;  %s1937_s5 = sshll.u32 %s2787_s0, 5 }
  0x7a   : > { %s902_s6 = scalar_lea.vmem %s3109_s29, %s1934_s10  ;;  %s907_s8 = scalar_lea.vmem %s3110_s2, %s1934_s10 }
  0x7b   : > { %s2803_s14 = scalar_lea.vmem %s3111_s3, %s1934_s10  ;;  %s3114_s29 = sld [smem:[#allocation45_spill]] }
  0x7c   : > { %s3115_s2 = sld [smem:[#allocation46_spill]]  ;;  %s932_s7 = scalar_lea.vmem %s3116_s12, %s2787_s0 }
  0x7d   : > { %s935_s18 = scalar_lea.vmem %s3117_s19, %s2787_s0  ;;  %s938_s4 = scalar_lea.vmem %s3118_s30, %s2787_s0 }
  0x7e   : > { %943 = sbr.rel (%p1857_p5) target bundleno = 133 (0x85), region = 116 }
  0x81   : > { %s2817_s25 = scalar_lea.vmem %s3114_s29, %s1937_s5 }
  0x82   : > { %s929_s21 = scalar_lea.vmem %s3115_s2, %s2787_s0 }
  0x83   : > { %v944_v0 = vld [vmem:[%s2754_s1] sm:$0xff]  ;;  %vm945_vm0 = vcmask 261120  }
  0x84   : > { %946 = vst.msk [vmem:[%s2837_s9] sm:$0xff] %vm945_vm0, %v944_v0 }
  0x85 PF: > { %v1939_v1 = vld [vmem:[%s902_s6 + $0x8] sm:$0xff]  ;;  %vm1000_vm1 = vcmask 261120   ;;  %v1938_v5 = vld [vmem:[%s902_s6] sm:$0xff]  ;;  %s3120_s1 = scalar_lea.vmem [#allocation5], %s2762_s22  ;;  %s3121_s5 = sld [smem:[#allocation40_spill]]  ;;  %vm1091_vm2 = vcmask 64512  }
  0x86   : > { %v1941_v2 = vld [vmem:[%s907_s8 + $0x8] sm:$0xff]  ;;  %v1008_v3 = vsel %vm1000_vm1, %v1939_v1, 0  ;;  %v1940_v6 = vld [vmem:[%s907_s8] sm:$0xff]  ;;  %v1005_v7 = vsel %vm1000_vm1, %v1938_v5, 0  ;;  %s2438_s8 = smov 104   ;;  %s2439_s27 = smov 120  }
  0x87   : > { %v1041_v4 = vsel %vm1000_vm1, %v1941_v2, 0  ;;  %1016 = vmatpush.bf16.xpose.msra.mxu0 %v1008_v3  ;;  %v1038_v8 = vsel %vm1000_vm1, %v1940_v6, 0  ;;  %v2088_v11 = vld [vmem:[%s3120_s1] ss:$0 sm:$0xff]  ;;  %s2440_s29 = smov 112   ;;  %v1943_v23 = vld [vmem:[%s2803_s14 + $0x8] sm:$0xff] }
  0x88   : > { %1049 = vmatpush.bf16.xpose.msra.mxu1 %v1041_v4  ;;  %v1073_v24 = vsel %vm1000_vm1, %v1943_v23, 0  ;;  %v1942_v25 = vld [vmem:[%s2803_s14] sm:$0xff]  ;;  %s3123_s17 = sld [smem:[#allocation42_spill]]  ;;  %vm1126_vm3 = vcmask 1043456   ;;  %s2441_s3 = smov 8   ;;  %vm1327_vm4 = vcmask 130048  }
  0x89   : > { %1081 = vmatpush.bf16.xpose.msra.mxu2 %v1073_v24  ;;  %v1070_v26 = vsel %vm1000_vm1, %v1942_v25, 0  ;;  %s2442_s10 = smov 16   ;;  %s2443_s12 = smov 24   ;;  %vm1329_vm5 = vcmask 195584   ;;  %vm1472_vm7 = vcmask 523264  }
  0x8a   : > { %s3125_s19 = sld [smem:[#allocation44_spill]]  ;;  %s1540_s13 = sshll.u32 %s2837_s9, 4  ;;  %s1541_s13 = int_to_ptr.vmem [resolvable:$true] %s1540_s13 }
  0x8b   : > { %v2847_v9 = vld [vmem:[%s2837_s9] sm:$0xff]  ;;  %s3122_s6 = scalar_lea.vmem %s3121_s5, %s2787_s0  ;;  %s3127_s28 = sld [smem:[#allocation35_spill]] }
  0x8c   : > { %v986_v10 = vpack.c.bf16 %v2847_v9, %v2847_v9  ;;  %v2089_v12 = vld [vmem:[%s3122_s6] ss:$0 sm:$0xff]  ;;  %s3134_s20 = sld [smem:[#allocation53_spill]] }
  0x8e   : > { %s3124_s2 = scalar_lea.vmem %s3123_s17, %s2787_s0 }
  0x8f   : > { %1017 = vmatpush.bf16.xpose.msra.mxu0 %v1005_v7  ;;  %v2090_v40 = vld [vmem:[%s3124_s2] ss:$0 sm:$0xff] }
  0x90   : > { %1050 = vmatpush.bf16.xpose.msra.mxu1 %v1038_v8 }
  0x91   : > { %1082 = vmatpush.bf16.xpose.msra.mxu2 %v1070_v26 }
  0x96   : > { %1866 = vmatmul.msk.bf16.vlgmr.msra.gmra.mxu0 %vm1000_vm1, %v986_v10 }
  0x97   : > { %1875 = vmatmul.msk.bf16.vlgmr.msra.gmra.mxu1 %vm1000_vm1, %v986_v10 }
  0x98   : > { %1884 = vmatmul.msk.bf16.vlgmr.msra.gmra.mxu2 %vm1000_vm1, %v986_v10 }
 0x113   : > { %v1019_v13 = vpop.f32.mrf.mxu0 }
 0x114   : > { %v1052_v14 = vpop.f32.mrf.mxu1  ;;  %v1020_v15 = vadd.f32 %v2088_v11, %v1019_v13 }
 0x115   : > { %v1053_v16 = vadd.f32 %v2089_v12, %v1052_v14 }
 0x116   : > { %v1023_v17 = vmul.f32 0.35355338, %v1020_v15 }
 0x117   : > { %v1089_v18 = vpack.c.bf16 %v1053_v16, %v1053_v16 }
 0x118   : > { %v1088_v19 = vpack.c.bf16 %v1023_v17, %v1023_v17 }
 0x119   : > { %1260 = vrot.lane.b32.xlu2 %v1089_v18, %s2438_s8  ;;  %1147 = vrot.lane.b32.xlu0 %v1089_v18, %s2439_s27  ;;  %v1096_v20 = vsel %vm1091_vm2, %v1089_v18, 0 }
 0x11a   : > { %1105 = vmatpush.bf16.xpose.msrb.mxu1 %v1096_v20  ;;  %1144 = vrot.lane.b32.xlu1 %v1088_v19, %s2439_s27 }
 0x11b   : > { %v1021_v21 = vpop.f32.mrf.mxu0  ;;  %v1084_v39 = vpop.f32.mrf.mxu2 }
 0x11c   : > { %v1054_v22 = vpop.f32.mrf.mxu1  ;;  %v1085_v41 = vadd.f32 %v2090_v40, %v1084_v39 }
 0x11e   : > { %v1090_v43 = vpack.c.bf16 %v1085_v41, %v1085_v41  ;;  %v1945_v41 = vld [vmem:[%s2770_s24 + $0x8] sm:$0xff] }
 0x120   : > { %v1128_v44 = vsel %vm1126_vm3, %v1090_v43, 0 }
 0x121   : > { %1204 = vrot.lane.b32.xlu0 %v1089_v18, %s2440_s29  ;;  %1258 = vrot.lane.b32.xlu2 %v1088_v19, %s2438_s8 }
 0x122   : > { %1885 = vmatmul.msk.bf16.vlgmr.msrb.gmra.mxu1 %vm1091_vm2, %v1088_v19  ;;  %1202 = vrot.lane.b32.xlu1 %v1088_v19, %s2440_s29 }
 0x123   : > { %v1086_v42 = vpop.f32.mrf.mxu2  ;;  %1137 = vmatpush.bf16.msra.mxu3 %v1128_v44 }
 0x124   : > { %v1352_v42 = vsel %vm1000_vm1, %v1945_v41, 0 }
 0x173   : > { %v1261_v27 = vpop.permute.xlu2 %1260 }
 0x174   : > { %v1266_v30 = vsel %vm1091_vm2, %v1261_v27, 0 }
 0x17b   : > { %v1259_v37 = vpop.permute.xlu2 %1258 }
 0x18b   : > { %v1148_v28 = vpop.permute.xlu0 %1147 }
 0x18c   : > { %v1153_v29 = vsel %vm1091_vm2, %v1148_v28, 0  ;;  %v1145_v31 = vpop.permute.xlu1 %1144 }
 0x18d   : > { %1162 = vmatpush.bf16.xpose.msrb.mxu0 %v1153_v29 }
 0x193   : > { %v1205_v32 = vpop.permute.xlu0 %1204 }
 0x194   : > { %1887 = vmatmul.msk.bf16.vlgmr.msrb.gmra.mxu0 %vm1091_vm2, %v1145_v31  ;;  %v1210_v33 = vsel %vm1091_vm2, %v1205_v32, 0  ;;  %v1203_v34 = vpop.permute.xlu1 %1202 }
 0x195   : > { %1275 = vmatpush.bf16.xpose.msra.mxu0 %v1266_v30  ;;  %1219 = vmatpush.bf16.xpose.msrb.mxu2 %v1210_v33 }
 0x19c   : > { %1889 = vmatmul.msk.bf16.vlgmr.msrb.gmra.mxu2 %vm1091_vm2, %v1203_v34 }
 0x19d   : > { %1360 = vmatpush.bf16.xpose.msra.mxu2 %v1352_v42 }
 0x19f   : > { %v1107_v35 = vpop.f32.mrf.mxu1 }
 0x1a0   : > { %v1111_v36 = vsel %vm1091_vm2, %v1107_v35, -inf }
 0x1a1   : > { %1112 = vmax.xlane.f32.xlu0 %v1111_v36 }
 0x1a4   : > { %1891 = vmatmul.msk.bf16.vlgmr.msra.gmra.mxu0 %vm1091_vm2, %v1259_v37 }
 0x1a7   : > { %v1109_v38 = vpop.f32.mrf.mxu1 }
 0x211   : > { %v1164_v45 = vpop.f32.mrf.mxu0 }
 0x212   : > { %v1168_v46 = vsel %vm1091_vm2, %v1164_v45, -inf }
 0x213   : > { %1169 = vmax.xlane.f32.xlu1 %v1168_v46 }
 0x214   : > { %v1113_v47 = vpop.xlane.xlu0 %1112 }
 0x215   : > { %v1114_v48 = vsub.f32 %v1107_v35, %v1113_v47 }
 0x217   : > { %v1115_v49 = vmul.f32 1.442695, %v1114_v48 }
 0x219   : > { %2098 = vpow2.f32 %v1115_v49  ;;  %v1166_v50 = vpop.f32.mrf.mxu0 }
 0x21f   : > { %v2099_v51 = vpop.eup %2098  ;;  %v1221_v52 = vpop.f32.mrf.mxu2 }
 0x220   : > { %v1117_v53 = vsel %vm1091_vm2, %v2099_v51, 0.0  ;;  %v1225_v54 = vsel %vm1091_vm2, %v1221_v52, -inf }
 0x221   : > { %1118 = vadd.xlane.f32.xlu0 %v1117_v53  ;;  %v1277_v55 = vpop.f32.mrf.mxu0  ;;  %1226 = vmax.xlane.f32.xlu2 %v1225_v54 }
 0x222   : > { %v1281_v57 = vsel %vm1091_vm2, %v1277_v55, -inf }
 0x227   : > { %v1223_v56 = vpop.f32.mrf.mxu2 }
 0x229   : > { %v1279_v58 = vpop.f32.mrf.mxu0  ;;  %1282 = vmax.xlane.f32.xlu2 %v1281_v57 }
 0x22a   : > { %v2444_v58 = vmov 32.0  }
 0x241   : > { %1181 = vrot.lane.b32.xlu2 %v1090_v43, %s2439_s27  ;;  %s3133_s27 = scalar_lea.vmem [#allocation11], %s2762_s22 }
 0x286   : > { %v1170_v59 = vpop.xlane.xlu1 %1169 }
 0x287   : > { %v1171_v60 = vsub.f32 %v1164_v45, %v1170_v59  ;;  %v1949_v59 = vld [vmem:[%s2817_s25 + $0x18] sm:$0xff] }
 0x289   : > { %v1172_v61 = vmul.f32 1.442695, %v1171_v60  ;;  %v1442_v60 = vsel %vm1000_vm1, %v1949_v59, 0 }
 0x28b   : > { %2100 = vpow2.f32 %v1172_v61 }
 0x291   : > { %v2101_v62 = vpop.eup %2100 }
 0x292   : > { %v1174_v63 = vsel %vm1091_vm2, %v2101_v62, 0.0 }
 0x293   : > { %1175 = vadd.xlane.f32.xlu1 %v1174_v63 }
 0x294   : > { %v1119_v0 = vpop.xlane.xlu0 %1118  ;;  %v1227_v1 = vpop.xlane.xlu2 %1226 }
 0x295   : > { %2102 = vrcp.f32 %v1119_v0  ;;  %v1228_v2 = vsub.f32 %v1221_v52, %v1227_v1 }
 0x297   : > { %v1229_v3 = vmul.f32 1.442695, %v1228_v2 }
 0x299   : > { %2104 = vpow2.f32 %v1229_v3 }
 0x29b   : > { %v2103_v4 = vpop.eup %2102 }
 0x29c   : > { %v1283_v5 = vpop.xlane.xlu2 %1282  ;;  %v1121_v6 = vmul.f32 %v2103_v4, %v2099_v51 }
 0x29d   : > { %v1284_v7 = vsub.f32 %v1277_v55, %v1283_v5 }
 0x29e   : > { %v1122_v8 = vpack.c.bf16 %v1121_v6, %v1121_v6 }
 0x29f   : > { %v2105_v10 = vpop.eup %2104  ;;  %v1285_v11 = vmul.f32 1.442695, %v1284_v7  ;;  %v1948_v7 = vld [vmem:[%s2817_s25 + $0x10] sm:$0xff] }
 0x2a0   : > { %1886 = vmatmul.msk.bf16.vlgmr.msra.gmra.mxu3 %vm1091_vm2, %v1122_v8  ;;  %v1231_v12 = vsel %vm1091_vm2, %v2105_v10, 0.0  ;;  %v1439_v8 = vsel %vm1000_vm1, %v1948_v7, 0 }
 0x2a1   : > { %2106 = vpow2.f32 %v1285_v11  ;;  %1232 = vadd.xlane.f32.xlu0 %v1231_v12  ;;  %v1946_v12 = vld [vmem:[%s2817_s25] sm:$0xff] }
 0x2a4   : > { %v1182_v13 = vpop.permute.xlu2 %1181 }
 0x2a5   : > { %v1187_v14 = vsel %vm1126_vm3, %v1182_v13, 0  ;;  %v1433_v13 = vsel %vm1000_vm1, %v1946_v12, 0 }
 0x2a6   : > { %1196 = vmatpush.bf16.msra.mxu1 %v1187_v14  ;;  %v1951_v14 = vld [vmem:[%s3127_s28 + $0x8] sm:$0xff] }
 0x2a7   : > { %v2107_v15 = vpop.eup %2106 }
 0x2a8   : > { %v1287_v16 = vsel %vm1091_vm2, %v2107_v15, 0.0 }
 0x2a9   : > { %1288 = vadd.xlane.f32.xlu1 %v1287_v16 }
 0x2b5   : > { %1237 = vrot.lane.b32.xlu0 %v1090_v43, %s2440_s29 }
 0x2c2   : > { %1293 = vrot.lane.b32.xlu1 %v1090_v43, %s2438_s8  ;;  %v1944_v43 = vld [vmem:[%s2770_s24] sm:$0xff]  ;;  %s3126_s24 = scalar_lea.vmem %s3125_s19, %s2787_s0  ;;  %s2320_s0 = scalar_lea.hbm %s3134_s20, 16 }
 0x2c3   : > { %v1349_v44 = vsel %vm1000_vm1, %v1944_v43, 0  ;;  %v2091_v52 = vld [vmem:[%s3126_s24] ss:$0 sm:$0xff] }
 0x2c4   : > { %1361 = vmatpush.bf16.xpose.msra.mxu2 %v1349_v44 }
 0x306   : > { %v1176_v17 = vpop.xlane.xlu1 %1175 }
 0x307   : > { %2108 = vrcp.f32 %v1176_v17  ;;  %v1480_v17 = vsel %vm1472_vm7, %v1951_v14, 0 }
 0x308   : > { %1488 = vmatpush.bf16.xpose.msrb.mxu0 %v1480_v17 }
 0x30d   : > { %v2109_v18 = vpop.eup %2108 }
 0x30e   : > { %v1178_v19 = vmul.f32 %v2109_v18, %v2101_v62 }
 0x310   : > { %v1179_v20 = vpack.c.bf16 %v1178_v19, %v1178_v19 }
 0x312   : > { %1888 = vmatmul.msk.bf16.vlgmr.msra.gmra.mxu1 %vm1091_vm2, %v1179_v20 }
 0x314   : > { %v1233_v21 = vpop.xlane.xlu0 %1232 }
 0x315   : > { %2110 = vrcp.f32 %v1233_v21 }
 0x31b   : > { %v2111_v22 = vpop.eup %2110 }
 0x31c   : > { %v1235_v24 = vmul.f32 %v2111_v22, %v2105_v10  ;;  %v1289_v25 = vpop.xlane.xlu1 %1288  ;;  %v1947_v10 = vld [vmem:[%s2817_s25 + $0x8] sm:$0xff]  ;;  %s3128_s25 = scalar_lea.vmem [#allocation10], %s2762_s22  ;;  %s1528_s22 = scalar_lea.sflag [#allocation4], %s2748_s23 }
 0x31d   : > { %2112 = vrcp.f32 %v1289_v25  ;;  %v1436_v11 = vsel %vm1000_vm1, %v1947_v10, 0  ;;  %v2092_v25 = vld [vmem:[%s3128_s25] ss:$0 sm:$0xff] }
 0x31e   : > { %v1236_v28 = vpack.c.bf16 %v1235_v24, %v1235_v24  ;;  %2114 = vrcp.f32 %v2444_v58 }
 0x323   : > { %v1139_v23 = vpop.f32.mrf.mxu3  ;;  %v2113_v30 = vpop.eup %2112 }
 0x324   : > { %v1291_v31 = vmul.f32 %v2113_v30, %v2107_v15  ;;  %v2115_v61 = vpop.eup %2114 }
 0x325   : > { %v1372_v62 = vmul.f32 32.0, %v2115_v61  ;;  %vm1376_vm6 = vweird.f32 %v2115_v61 }
 0x326   : > { %v1292_v34 = vpack.c.bf16 %v1291_v31, %v1291_v31 }
 0x327   : > { %v1238_v26 = vpop.permute.xlu0 %1237  ;;  %v1373_v63 = vsub.f32 1.0, %v1372_v62 }
 0x328   : > { %v1243_v27 = vsel %vm1126_vm3, %v1238_v26, 0 }
 0x329   : > { %1252 = vmatpush.bf16.msrb.mxu3 %v1243_v27  ;;  %v1374_v0 = vmul.f32 %v2115_v61, %v1373_v63  ;;  %v2093_v27 = vld [vmem:[%s935_s18] ss:$0 sm:$0xff] }
 0x32a   : > { %v2097_v63 = vld [vmem:[%s938_s4] ss:$0 sm:$0xff] }
 0x32b   : > { %v1141_v29 = vpop.f32.mrf.mxu3  ;;  %v1375_v1 = vadd.f32 %v2115_v61, %v1374_v0 }
 0x32c   : > { %1890 = vmatmul.msk.bf16.vlgmr.msrb.gmra.mxu3 %vm1091_vm2, %v1236_v28 }
 0x32d   : > { %1448 = vmatpush.bf16.xpose.msra.mxu3 %v1442_v60  ;;  %v2096_v60 = vld [vmem:[%s3133_s27] ss:$0 sm:$0xff] }
 0x334   : > { %v1294_v32 = vpop.permute.xlu1 %1293 }
 0x335   : > { %v1299_v33 = vsel %vm1126_vm3, %v1294_v32, 0  ;;  %1449 = vmatpush.bf16.xpose.msra.mxu3 %v1439_v8  ;;  %v1950_v32 = vld [vmem:[%s3127_s28] sm:$0xff] }
 0x336   : > { %1308 = vmatpush.bf16.msrb.mxu1 %v1299_v33  ;;  %v1477_v33 = vsel %vm1472_vm7, %v1950_v32, 0 }
 0x337   : > { %1489 = vmatpush.bf16.xpose.msrb.mxu0 %v1477_v33 }
 0x339   : > { %1892 = vmatmul.msk.bf16.vlgmr.msrb.gmra.mxu1 %vm1091_vm2, %v1292_v34  ;;  %v2094_v34 = vld [vmem:[%s929_s21] ss:$0 sm:$0xff]  ;;  %s3132_s21 = sld [smem:[#allocation25_spill]] }
 0x33d   : > { %1450 = vmatpush.bf16.xpose.msra.mxu3 %v1436_v11 }
 0x345   : > { %1451 = vmatpush.bf16.xpose.msra.mxu3 %v1433_v13 }
 0x38f   : > { %v1198_v35 = vpop.f32.mrf.mxu1 }
 0x390   : > { %1315 = vrot.lane.b32.xlu2 %v1198_v35, %s2441_s3 }
 0x397   : > { %v1200_v36 = vpop.f32.mrf.mxu1 }
 0x3af   : > { %v1254_v37 = vpop.f32.mrf.mxu3 }
 0x3b0   : > { %1319 = vrot.lane.b32.xlu0 %v1254_v37, %s2442_s10 }
 0x3b6   : > { %v1310_v38 = vpop.f32.mrf.mxu1 }
 0x3b7   : > { %v1256_v39 = vpop.f32.mrf.mxu3  ;;  %1323 = vrot.lane.b32.xlu2 %v1310_v38, %s2443_s12 }
 0x3be   : > { %v1312_v40 = vpop.f32.mrf.mxu1 }
 0x3bf   : > { %v2095_v40 = vld [vmem:[%s932_s7] ss:$0 sm:$0xff]  ;;  %s1929_s7 = sshll.u32 %s3132_s21, 3 }
 0x3c0   : > { %s1538_s17 = scalar_lea.hbm %s3134_s20, %s1929_s7 }
 0x3c1   : > { %s1542_s15 = sshll.u32 %s1538_s17, 4  ;;  %s1543_s15 = int_to_ptr.hbm [resolvable:$true] %s1542_s15 }
 0x3c2   : > { %s2314_s19 = sshra.s32 %s1543_s15, 4  ;;  %s2315_s19 = int_to_ptr.hbm [resolvable:$true] %s2314_s19 }
 0x3c3   : > { %s2316_s24 = scalar_lea.hbm %s2315_s19, 8  ;;  %p2321_p13 = scmp.lt.s32.totalorder %s2315_s19, %s3134_s20 }
 0x3c4   : > { %p2317_p8 = scmp.ne.s32.totalorder %s2315_s19, %s2316_s24  ;;  %p2322_p4 = scmp.lt.s32.totalorder %s2320_s0, %s2316_s24 }
 0x3c6   : > { %p2318_p11 = pnand %p2317_p8, %p2702_p6  ;;  %p2323_p0 = por %p2322_p4, %p2321_p13 }
 0x3c8   : > { %p2319_p12 = pneg %p2318_p11 }
 0x3ca   : > { %p2324_p7 = pnand %p2323_p0, %p2319_p12 }
 0x3ea   : > { %v1316_v45 = vpop.permute.xlu2 %1315 }
 0x3eb   : > { %v1326_v46 = vsel %vm1091_vm2, %v1139_v23, %v1316_v45 }
 0x411   : > { %v1324_v48 = vpop.permute.xlu2 %1323 }
 0x422   : > { %v1320_v47 = vpop.permute.xlu0 %1319 }
 0x423   : > { %v1328_v49 = vsel %vm1327_vm4, %v1326_v46, %v1320_v47 }
 0x424   : > { %v1330_v50 = vsel %vm1329_vm5, %v1328_v49, %v1324_v48 }
 0x425   : > { %v1331_v51 = vpack.c.bf16 %v1330_v50, %v1330_v50 }
 0x427   : > { %1901 = vmatmul.msk.bf16.vlgmr.msra.gmra.mxu2 %vm1000_vm1, %v1331_v51 }
 0x4aa   : > { %v1363_v53 = vpop.f32.mrf.mxu2 }
 0x4ab   : > { %v1364_v54 = vadd.f32 %v2091_v52, %v1363_v53 }
 0x4ad   : > { %v1367_v55 = vadd.f32 %v1364_v54, %v2847_v9  ;;  %v2918_v9 = vsel %vm1376_vm6, %v2115_v61, %v1375_v1 }
 0x4af   : > { %v1368_v56 = vsel %vm1000_vm1, %v1367_v55, 0.0 }
 0x4b0   : > { %1369 = vadd.xlane.f32.xlu1 %v1368_v56 }
 0x4b2   : > { %v1365_v57 = vpop.f32.mrf.mxu2 }
 0x523   : > { %v1370_v2 = vpop.xlane.xlu1 %1369 }
 0x524   : > { %v1378_v3 = vmul.f32 %v2918_v9, %v1370_v2 }
 0x526   : > { %v1379_v4 = vsub.f32 %v1367_v55, %v1378_v3 }
 0x528   : > { %v1380_v5 = vmul.f32 %v1379_v4, %v1379_v4 }
 0x52a   : > { %v1381_v6 = vsel %vm1000_vm1, %v1380_v5, 0.0 }
 0x52b   : > { %1382 = vadd.xlane.f32.xlu0 %v1381_v6 }
 0x59e   : > { %v1383_v15 = vpop.xlane.xlu0 %1382 }
 0x59f   : > { %v1384_v16 = vmul.f32 %v1383_v15, %v2918_v9 }
 0x5a1   : > { %v1385_v18 = vadd.f32 1e-05, %v1384_v16 }
 0x5a3   : > { %2116 = vrsqrt.f32 %v1385_v18  ;;  %vm1392_vm9 = vweird.f32 %v1385_v18 }
 0x5a9   : > { %v2117_v19 = vpop.eup %2116 }
 0x5aa   : > { %v1387_v20 = vmul.f32 %v2117_v19, %v1385_v18  ;;  %vm1393_vm8 = vweird.f32 %v2117_v19 }
 0x5ab   : > { %vm1394_vm10 = vmor %vm1392_vm9, %vm1393_vm8 }
 0x5ac   : > { %v1388_v21 = vmul.f32 %v2117_v19, %v1387_v20 }
 0x5ae   : > { %v1389_v22 = vmul.f32 0.5, %v1388_v21 }
 0x5b0   : > { %v1390_v23 = vsub.f32 1.5, %v1389_v22 }
 0x5b2   : > { %v1391_v24 = vmul.f32 %v2117_v19, %v1390_v23 }
 0x5b4   : > { %v1395_v26 = vsel %vm1394_vm10, %v2117_v19, %v1391_v24 }
 0x5b5   : > { %v1396_v28 = vmul.f32 %v1395_v26, %v1379_v4 }
 0x5b7   : > { %v1400_v29 = vmul.f32 %v2092_v25, %v1396_v28 }
 0x5b9   : > { %v1404_v30 = vadd.f32 %v2093_v27, %v1400_v29 }
 0x5bb   : > { %v1405_v31 = vpack.c.bf16 %v1404_v30, %v1404_v30 }
 0x5bd   : > { %1918 = vmatmul.msk.bf16.vlgmr.msra.gmra.mxu3 %vm1000_vm1, %v1405_v31 }
 0x640   : > { %v1453_v35 = vpop.f32.mrf.mxu3 }
 0x641   : > { %v1454_v36 = vadd.f32 %v2094_v34, %v1453_v35 }
 0x643   : > { %v1457_v37 = vmax.f32 %v1454_v36, 0.0 }
 0x645   : > { %v1458_v38 = vpack.c.bf16 %v1457_v37, %v1457_v37 }
 0x647   : > { %1927 = vmatmul.msk.bf16.vlgmr.msrb.gmra.mxu0 %vm1472_vm7, %v1458_v38 }
 0x648   : > { %v1455_v39 = vpop.f32.mrf.mxu3 }
 0x6c4   : > { %v1491_v41 = vpop.f32.mrf.mxu0 }
 0x6c5   : > { %v1492_v42 = vadd.f32 %v2095_v40, %v1491_v41 }
 0x6c7   : > { %v1495_v43 = vadd.f32 %v1492_v42, %v1404_v30 }
 0x6c9   : > { %v1496_v44 = vsel %vm1000_vm1, %v1495_v43, 0.0 }
 0x6ca   : > { %1497 = vadd.xlane.f32.xlu2 %v1496_v44 }
 0x6cc   : > { %v1493_v45 = vpop.f32.mrf.mxu0 }
 0x73d   : > { %v1498_v46 = vpop.xlane.xlu2 %1497 }
 0x73e   : > { %v1499_v47 = vmul.f32 %v1498_v46, %v2918_v9 }
 0x740   : > { %v1500_v48 = vsub.f32 %v1495_v43, %v1499_v47 }
 0x742   : > { %v1501_v49 = vmul.f32 %v1500_v48, %v1500_v48 }
 0x744   : > { %v1502_v50 = vsel %vm1000_vm1, %v1501_v49, 0.0 }
 0x745   : > { %1503 = vadd.xlane.f32.xlu1 %v1502_v50 }
 0x7b8   : > { %v1504_v51 = vpop.xlane.xlu1 %1503 }
 0x7b9   : > { %v1505_v52 = vmul.f32 %v1504_v51, %v2918_v9 }
 0x7bb   : > { %v1506_v53 = vadd.f32 1e-05, %v1505_v52 }
 0x7bd   : > { %2118 = vrsqrt.f32 %v1506_v53  ;;  %vm1513_vm12 = vweird.f32 %v1506_v53 }
 0x7c3   : > { %v2119_v54 = vpop.eup %2118 }
 0x7c4   : > { %v1508_v55 = vmul.f32 %v2119_v54, %v1506_v53  ;;  %vm1514_vm11 = vweird.f32 %v2119_v54 }
 0x7c5   : > { %vm1515_vm13 = vmor %vm1513_vm12, %vm1514_vm11 }
 0x7c6   : > { %v1509_v56 = vmul.f32 %v2119_v54, %v1508_v55 }
 0x7c8   : > { %v1510_v57 = vmul.f32 0.5, %v1509_v56 }
 0x7ca   : > { %v1511_v58 = vsub.f32 1.5, %v1510_v57 }
 0x7cc   : > { %v1512_v59 = vmul.f32 %v2119_v54, %v1511_v58 }
 0x7ce   : > { %v1516_v61 = vsel %vm1515_vm13, %v2119_v54, %v1512_v59 }
 0x7cf   : > { %v1517_v62 = vmul.f32 %v1516_v61, %v1500_v48 }
 0x7d1   : > { %v1521_v0 = vmul.f32 %v2096_v60, %v1517_v62 }
 0x7d3   : > { %v1525_v1 = vadd.f32 %v2097_v63, %v1521_v0 }
 0x7d5   : > { %1526 = vst.msk [vmem:[%s2837_s9] sm:$0xff] %vm1000_vm1, %v1525_v1 }
 0x7d6   : > { %2327 = shalt.err (!%p2324_p7)
}
 0x7d7   : > { %1964 = dma.vmem_to_hbm [thread:$0]  (%p2702_p6), %s1541_s13, 128, %s1543_s15, %s1528_s22  }
 0x7d8 PF: > { %s3137_s23 = sld [smem:[#allocation28_spill]] }
 0x7d9   : > { %s3138_s9 = sld [smem:[#allocation21_spill]] }
 0x7de   : > { %p1990_p9 = scmp.ge.s32.totalorder %s3137_s23, 2 }
 0x7df   : > { %s1554_s1 = sand.u32 1, %s3138_s9  }
 0x7e0   : > { %p1986_p1 = pnand %p1990_p9, %p2709_p2  ;;  %s1555_s26 = scalar_lea.sflag [#allocation4], %s1554_s1 }
 0x7e2   : > { %p1987_p10 = pneg %p1986_p1 }
 0x7e4   : > { %2389 = dma.done.wait (%p1987_p10), %s1555_s26, 128  }
 0x7e5   : > { %2391 = vsyncadd (%p1987_p10), %s1555_s26, 4294967168  ;;  %s42_s1 = sadd.s32 1, %s3137_s23   ;;  %s3140_s24 = sld [smem:[#allocation19_spill]] }
 0x7e6   : > { %p39_p3 = scmp.ge.s32.totalorder %s42_s1, 6   ;;  %s3141_s25 = sld [smem:[#allocation20_spill]] }
 0x7e7   : > { %s3142_s26 = sld [smem:[#allocation31_spill]] }
 0x7e8   : > { %s3143_s27 = sld [smem:[#allocation22_spill]] }
 0x7e9   : > { %s3144_s28 = sld [smem:[#allocation23_spill]] }
 0x7ea   : > { %s3145_s29 = sld [smem:[#allocation32_spill]]  ;;  %41 = sbr.rel (!%p39_p3) target bundleno = 34 (0x22), region = 231 }
 0x7eb   : > { %s3146_s0 = sld [smem:[#allocation26_spill]] }
 0x7ec   : > { %s3147_s30 = sld [smem:[#allocation27_spill]] }
 0x7ed   : > { %s3148_s18 = sld [smem:[#allocation29_spill]] }
 0x7ee   : > { %s3149_s19 = sld [smem:[#allocation30_spill]] }
 0x7ef   :  { %1561 = vsyncpa [#allocation3], 1 }
 0x7f0   :  { %1563 = vsyncpa [#allocation3 + $0x1], 1 }
 0x7f1   :  { %1564 = vsyncpa [#allocation6], 1 }
 0x7f2   :  { %1566 = vsyncpa [#allocation6 + $0x1], 1 }
 0x7f3   :  { %1567 = vsyncpa [#allocation9], 1 }
 0x7f4   :  { %1569 = vsyncpa [#allocation9 + $0x1], 1 }
 0x7f5   :  { %1570 = vsyncpa [#allocation12], 1 }
 0x7f6   :  { %1572 = vsyncpa [#allocation12 + $0x1], 1 }
 0x7f7   :  { %1573 = vsyncpa [#allocation4], 1 }
 0x7f8   :  { %1575 = vsyncpa [#allocation4 + $0x1], 1 }

</bundles_post_ra>
